<compile_context>
chip_gen: v7x
topology: tpu7x:2x2x1
jax: 0.10.0
libtpu: 0.0.40
codegen_flags: <defaults>
</compile_context>

<pallas_src>
import jax
import jax.numpy as jnp
from jax.experimental import pallas as pl
from jax.experimental.pallas import tpu as pltpu


NEG_SLOPE = 0.01   # nn.LeakyReLU() default
HEAD_W = 128       # lane-dense width for the fused [mu | logvar] output


def _lrelu(v):
    return jnp.where(v > 0, v, NEG_SLOPE * v)


def cvae_kernel(
    x_ref,       # VMEM (TB, feat)                bf16
    eps_ref,     # VMEM (TB, latent)              f32
    yrows_ref,   # VMEM (TB, 2*hidden)            f32   [we1y row | wd1y row] per example
    we1x_ref,    # VMEM (feat, hidden)            bf16
    whid_ref,    # VMEM (hidden, 2*hidden+HEAD_W) f32   [we2 | wd2 | wmu|wvar|0pad]
    wd1z_ref,    # VMEM (latent, hidden)          f32
    wd3_ref,     # VMEM (hidden, feat)            bf16
    bias_ref,    # VMEM (1, 4*hidden+feat+HEAD_W) f32   [be1|be2|bd1|bd2|bd3|bmu|bvar|0pad]
    xrec_ref,    # out  (TB, feat)                f32
    head_ref,    # out  (TB, HEAD_W)              f32   [mu | logvar | 0pad]
):
    H = whid_ref.shape[0]
    L = eps_ref.shape[1]
    FEAT = xrec_ref.shape[1]
    HW = head_ref.shape[1]

    # ---- static, 128-aligned slices of the packed operands (ref slicing is free)
    be1 = bias_ref[:, 0:H]
    be2 = bias_ref[:, H:2 * H]
    bd1 = bias_ref[:, 2 * H:3 * H]
    bd2 = bias_ref[:, 3 * H:4 * H]
    bd3 = bias_ref[:, 4 * H:4 * H + FEAT]
    bhead = bias_ref[:, 4 * H + FEAT:4 * H + FEAT + HW]

    we2 = whid_ref[:, 0:H]
    wd2 = whid_ref[:, H:2 * H]
    whead = whid_ref[:, 2 * H:2 * H + HW]

    y_enc = yrows_ref[:, :H]     # rows of we1y  (encoder class contribution)
    y_dec = yrows_ref[:, H:]     # rows of wd1y  (decoder class contribution)

    # ---- encoder: Linear(feat+class, H) -> LReLU -> Linear(H, H) -> LReLU
    h = _lrelu(
        jnp.dot(x_ref[...], we1x_ref[...], preferred_element_type=jnp.float32)
        + y_enc + be1)
    h = _lrelu(jnp.dot(h, we2, preferred_element_type=jnp.float32) + be2)

    # ---- fused heads: one (H, HEAD_W) matmul -> [mu | logvar | 0pad]
    head = jnp.dot(h, whead, preferred_element_type=jnp.float32) + bhead
    mu = head[:, :L]
    logvar = head[:, L:2 * L]

    # ---- reparameterize: z = eps * exp(0.5*logvar) + mu
    std = jnp.exp(0.5 * logvar)
    z = eps_ref[...] * std + mu

    # ---- decoder: Linear(L+class, H) -> LReLU -> Linear(H, H) -> LReLU
    #               -> Linear(H, feat) -> "sigmoid" (actually LeakyReLU in the module)
    d = _lrelu(
        jnp.dot(z, wd1z_ref[...], preferred_element_type=jnp.float32)
        + y_dec + bd1)
    d = _lrelu(jnp.dot(d, wd2, preferred_element_type=jnp.float32) + bd2)
    logit = jnp.dot(d.astype(jnp.bfloat16), wd3_ref[...],
                    preferred_element_type=jnp.float32) + bd3
    xrec_ref[...] = _lrelu(logit)
    head_ref[...] = head


def init_params(key, feat_dim, class_dim, hidden_dim, latent_dim):
    """PyTorch-style uniform(+-1/sqrt(fan_in)) init; W stored transposed (in, out)."""
    raw = {}

    def linear(k, d_in, d_out):
        kw, kb = jax.random.split(k)
        bound = 1.0 / jnp.sqrt(d_in)
        w = jax.random.uniform(kw, (d_in, d_out), jnp.float32, -bound, bound)
        b = jax.random.uniform(kb, (1, d_out), jnp.float32, -bound, bound)
        return w, b

    keys = jax.random.split(key, 7)
    w_e1, raw["be1"] = linear(keys[0], feat_dim + class_dim, hidden_dim)
    raw["we1x"], raw["we1y"] = w_e1[:feat_dim], w_e1[feat_dim:]
    raw["we2"], raw["be2"] = linear(keys[1], hidden_dim, hidden_dim)
    raw["wmu"], raw["bmu"] = linear(keys[2], hidden_dim, latent_dim)
    raw["wvar"], raw["bvar"] = linear(keys[3], hidden_dim, latent_dim)
    w_d1, raw["bd1"] = linear(keys[4], latent_dim + class_dim, hidden_dim)
    raw["wd1z"], raw["wd1y"] = w_d1[:latent_dim], w_d1[latent_dim:]
    raw["wd2"], raw["bd2"] = linear(keys[5], hidden_dim, hidden_dim)
    raw["wd3"], raw["bd3"] = linear(keys[6], hidden_dim, feat_dim)
    return raw


def pack_params(raw):
    """Fuse/pack the raw per-layer params into the kernel's weight operands."""
    H = raw["we2"].shape[0]
    L = raw["wmu"].shape[1]
    assert 2 * L <= HEAD_W, "mu|logvar must fit in one 128-lane head"
    pad = HEAD_W - 2 * L

    packed = {}
    packed["we1x"] = raw["we1x"].astype(jnp.bfloat16)                     # (feat, H)
    packed["wd3"] = raw["wd3"].astype(jnp.bfloat16)                       # (H, feat)
    packed["ytab"] = jnp.concatenate([raw["we1y"], raw["wd1y"]], axis=1)  # (C, 2H)
    whead = jnp.concatenate(
        [raw["wmu"], raw["wvar"], jnp.zeros((H, pad), jnp.float32)], axis=1)  # (H, 128)
    packed["whid"] = jnp.concatenate([raw["we2"], raw["wd2"], whead], axis=1)  # (H, 2H+128)
    packed["wd1z"] = raw["wd1z"]                                           # (L, H)
    bhead = jnp.concatenate(
        [raw["bmu"], raw["bvar"], jnp.zeros((1, pad), jnp.float32)], axis=1)
    packed["bias"] = jnp.concatenate(
        [raw["be1"], raw["be2"], raw["bd1"], raw["bd2"], raw["bd3"], bhead], axis=1)
    return packed


def cvae_forward(x_nchw, labels, eps, packed, tb=8):
    """Replicates CVAE_Mnist_v0.forward. Returns (x_rec, mu, logvar)."""
    B = x_nchw.shape[0]
    feat_dim = x_nchw.shape[1] * x_nchw.shape[2] * x_nchw.shape[3]
    hidden_dim = packed["wd1z"].shape[1]
    latent_dim = eps.shape[1]
    class_dim = packed["ytab"].shape[0]
    assert feat_dim == 1024, "module hard-codes the (B,1,32,32) output reshape"

    # ---- host-side prep: bf16 x, class-row gather (replaces one-hot matmuls)
    x_flat = x_nchw.reshape(B, -1).astype(jnp.bfloat16)
    labels = jnp.clip(labels.astype(jnp.int32), 0, class_dim - 1)
    y_rows = jnp.take(packed["ytab"], labels, axis=0)          # (B, 2H) f32
    eps = eps.astype(jnp.float32)

    # ---- pad batch to a multiple of the tile
    n_blocks = -(-B // tb)
    b_pad = n_blocks * tb
    if b_pad != B:
        padn = b_pad - B
        x_flat = jnp.pad(x_flat, ((0, padn), (0, 0)))
        eps = jnp.pad(eps, ((0, padn), (0, 0)))
        y_rows = jnp.pad(y_rows, ((0, padn), (0, 0)))

    whid_w = packed["whid"].shape[1]
    bias_w = packed["bias"].shape[1]

    batched = lambda cols: pl.BlockSpec((tb, cols), lambda i: (i, 0))
    resident = lambda rows, cols: pl.BlockSpec((rows, cols), lambda i: (0, 0))

    x_rec_flat, head = pl.pallas_call(
        cvae_kernel,
        grid=(n_blocks,),
        out_shape=(
            jax.ShapeDtypeStruct((b_pad, feat_dim), jnp.float32),
            jax.ShapeDtypeStruct((b_pad, HEAD_W), jnp.float32),
        ),
        in_specs=[
            batched(feat_dim),                       # x
            batched(latent_dim),                     # eps
            batched(2 * hidden_dim),                 # y_rows
            resident(feat_dim, hidden_dim),          # we1x
            resident(hidden_dim, whid_w),            # whid
            resident(latent_dim, hidden_dim),        # wd1z
            resident(hidden_dim, feat_dim),          # wd3
            resident(1, bias_w),                     # bias
        ],
        out_specs=(
            batched(feat_dim),                       # x_rec
            batched(HEAD_W),                         # head
        ),
        compiler_params=pltpu.CompilerParams(
            dimension_semantics=("parallel",)),
    )(x_flat, eps, y_rows,
      packed["we1x"], packed["whid"], packed["wd1z"],
      packed["wd3"], packed["bias"])

    mu = head[:B, :latent_dim]
    logvar = head[:B, latent_dim:2 * latent_dim]
    x_rec = x_rec_flat[:B].reshape(B, 1, 32, 32)
    return x_rec, mu, logvar


def cvae_reference(x_nchw, labels, eps, raw, class_dim):
    """Pure-JAX reference (same bf16 casts on x and the two big weights)."""
    B = x_nchw.shape[0]
    x = x_nchw.reshape(B, -1).astype(jnp.bfloat16)
    y = jax.nn.one_hot(labels, class_dim, dtype=jnp.float32)
    h = _lrelu(
        jnp.dot(x, raw["we1x"].astype(jnp.bfloat16),
                preferred_element_type=jnp.float32)
        + y @ raw["we1y"] + raw["be1"])
    h = _lrelu(h @ raw["we2"] + raw["be2"])
    mu = h @ raw["wmu"] + raw["bmu"]
    logvar = h @ raw["wvar"] + raw["bvar"]
    z = eps * jnp.exp(0.5 * logvar) + mu
    d = _lrelu(z @ raw["wd1z"] + y @ raw["wd1y"] + raw["bd1"])
    d = _lrelu(d @ raw["wd2"] + raw["bd2"])
    logit = jnp.dot(d.astype(jnp.bfloat16), raw["wd3"].astype(jnp.bfloat16),
                    preferred_element_type=jnp.float32) + raw["bd3"]
    x_rec = _lrelu(logit).reshape(B, 1, 32, 32)
    return x_rec, mu, logvar


if __name__ == "__main__":
    # feat_dim must be 1024 (module reshapes output to (B,1,32,32)).
    # hidden=128 (lane-aligned); B=16 with TB=8 exercises the batch grid.
    B = 16
    TB = 8
    feat_dim = 32 * 32
    class_dim = 10
    hidden_dim = 128
    latent_dim = 16

    root = jax.random.PRNGKey(0)
    k_x, k_y, k_eps, k_params = jax.random.split(root, 4)

    x = jax.random.normal(k_x, (B, 1, 32, 32), jnp.float32)
    y = jax.random.randint(k_y, (B,), 0, class_dim, jnp.int32)
    # Deterministic stand-in for torch.FloatTensor(...).normal_() in reparameterize.
    eps = jax.random.normal(k_eps, (B, latent_dim), jnp.float32)

    raw = init_params(k_params, feat_dim, class_dim, hidden_dim, latent_dim)
    packed = pack_params(raw)

    x_rec, mu, logvar = cvae_forward(x, y, eps, packed, tb=TB)
    jax.block_until_ready((x_rec, mu, logvar))

    assert x_rec.shape == (B, 1, 32, 32)
    assert mu.shape == (B, latent_dim)
    assert logvar.shape == (B, latent_dim)

    # Correctness check against a pure-JAX reference with matching bf16 casts.
    r_xrec, r_mu, r_logvar = cvae_reference(x, y, eps, raw, class_dim)
    for got, want in ((x_rec, r_xrec), (mu, r_mu), (logvar, r_logvar)):
        err = float(jnp.max(jnp.abs(got - want)))
        assert err < 1e-2, f"mismatch vs reference: max abs err {err}"

    print("KERNEL_OK")
</pallas_src>

<mosaic_0001>
module attributes {stable_mosaic.version = 11 : i64} {
  func.func @cvae_kernel(%arg0: i32, %arg1: memref<8x1024xbf16, #tpu.memory_space<vmem>>, %arg2: memref<8x16xf32, #tpu.memory_space<vmem>>, %arg3: memref<8x256xf32, #tpu.memory_space<vmem>>, %arg4: memref<1024x128xbf16, #tpu.memory_space<vmem>>, %arg5: memref<128x384xf32, #tpu.memory_space<vmem>>, %arg6: memref<16x128xf32, #tpu.memory_space<vmem>>, %arg7: memref<128x1024xbf16, #tpu.memory_space<vmem>>, %arg8: memref<1x1664xf32, #tpu.memory_space<vmem>>, %arg9: memref<8x1024xf32, #tpu.memory_space<vmem>>, %arg10: memref<8x128xf32, #tpu.memory_space<vmem>>) attributes {dimension_semantics = [#tpu.dimension_semantics<parallel>], iteration_bounds = array<i64: 2>, scalar_prefetch = 0 : i64, scratch_operands = 0 : i64, tpu.core_type = #tpu.core_type<tc>, window_params = [{transform_indices = @transform_0, window_bounds = array<i64: 8, 1024>}, {transform_indices = @transform_1, window_bounds = array<i64: 8, 16>}, {transform_indices = @transform_2, window_bounds = array<i64: 8, 256>}, {pipeline_mode = #tpu.pipeline_mode<synchronous>, transform_indices = @transform_3, window_bounds = array<i64: 1024, 128>}, {pipeline_mode = #tpu.pipeline_mode<synchronous>, transform_indices = @transform_4, window_bounds = array<i64: 128, 384>}, {pipeline_mode = #tpu.pipeline_mode<synchronous>, transform_indices = @transform_5, window_bounds = array<i64: 16, 128>}, {pipeline_mode = #tpu.pipeline_mode<synchronous>, transform_indices = @transform_6, window_bounds = array<i64: 128, 1024>}, {pipeline_mode = #tpu.pipeline_mode<synchronous>, transform_indices = @transform_7, window_bounds = array<i64: 1, 1664>}, {transform_indices = @transform_8, window_bounds = array<i64: 8, 1024>}, {transform_indices = @transform_9, window_bounds = array<i64: 8, 128>}]} {
    %c0 = arith.constant 0 : index
    %c0_0 = arith.constant 0 : index
    %0 = vector.load %arg8[%c0, %c0_0] : memref<1x1664xf32, #tpu.memory_space<vmem>>, vector<1x128xf32>
    %c0_1 = arith.constant 0 : index
    %c128 = arith.constant 128 : index
    %1 = vector.load %arg8[%c0_1, %c128] : memref<1x1664xf32, #tpu.memory_space<vmem>>, vector<1x128xf32>
    %c0_2 = arith.constant 0 : index
    %c256 = arith.constant 256 : index
    %2 = vector.load %arg8[%c0_2, %c256] : memref<1x1664xf32, #tpu.memory_space<vmem>>, vector<1x128xf32>
    %c0_3 = arith.constant 0 : index
    %c384 = arith.constant 384 : index
    %3 = vector.load %arg8[%c0_3, %c384] : memref<1x1664xf32, #tpu.memory_space<vmem>>, vector<1x128xf32>
    %c0_4 = arith.constant 0 : index
    %c512 = arith.constant 512 : index
    %4 = vector.load %arg8[%c0_4, %c512] : memref<1x1664xf32, #tpu.memory_space<vmem>>, vector<1x1024xf32>
    %c0_5 = arith.constant 0 : index
    %c1536 = arith.constant 1536 : index
    %5 = vector.load %arg8[%c0_5, %c1536] : memref<1x1664xf32, #tpu.memory_space<vmem>>, vector<1x128xf32>
    %c0_6 = arith.constant 0 : index
    %c0_7 = arith.constant 0 : index
    %6 = vector.load %arg5[%c0_6, %c0_7] : memref<128x384xf32, #tpu.memory_space<vmem>>, vector<128x128xf32>
    %c0_8 = arith.constant 0 : index
    %c128_9 = arith.constant 128 : index
    %7 = vector.load %arg5[%c0_8, %c128_9] : memref<128x384xf32, #tpu.memory_space<vmem>>, vector<128x128xf32>
    %c0_10 = arith.constant 0 : index
    %c256_11 = arith.constant 256 : index
    %8 = vector.load %arg5[%c0_10, %c256_11] : memref<128x384xf32, #tpu.memory_space<vmem>>, vector<128x128xf32>
    %c0_12 = arith.constant 0 : index
    %c0_13 = arith.constant 0 : index
    %9 = vector.load %arg3[%c0_12, %c0_13] : memref<8x256xf32, #tpu.memory_space<vmem>>, vector<8x128xf32>
    %c0_14 = arith.constant 0 : index
    %c128_15 = arith.constant 128 : index
    %10 = vector.load %arg3[%c0_14, %c128_15] : memref<8x256xf32, #tpu.memory_space<vmem>>, vector<8x128xf32>
    %c0_16 = arith.constant 0 : index
    %c0_17 = arith.constant 0 : index
    %11 = vector.load %arg1[%c0_16, %c0_17] : memref<8x1024xbf16, #tpu.memory_space<vmem>>, vector<8x1024xbf16>
    %c0_18 = arith.constant 0 : index
    %c0_19 = arith.constant 0 : index
    %12 = vector.load %arg4[%c0_18, %c0_19] : memref<1024x128xbf16, #tpu.memory_space<vmem>>, vector<1024x128xbf16>
    %cst = arith.constant dense<0.000000e+00> : vector<8x128xf32>
    %13 = tpu.matmul %11, %12, %cst {dimension_numbers = #tpu.dot_dimension_numbers<[1], [0], [0], [1], [0, 0, 1, 1], [], []>} : vector<8x1024xbf16>, vector<1024x128xbf16>, vector<8x128xf32> -> vector<8x128xf32>
    %14 = arith.addf %13, %9 : vector<8x128xf32>
    %15 = vector.broadcast %0 : vector<1x128xf32> to vector<8x128xf32>
    %16 = arith.addf %14, %15 : vector<8x128xf32>
    %cst_20 = arith.constant 0.000000e+00 : f32
    %17 = vector.broadcast %cst_20 : f32 to vector<8x128xf32>
    %18 = arith.cmpf ogt, %16, %17 : vector<8x128xf32>
    %cst_21 = arith.constant 0.00999999977 : f32
    %19 = vector.broadcast %cst_21 : f32 to vector<8x128xf32>
    %20 = arith.mulf %19, %16 : vector<8x128xf32>
    %21 = arith.select %18, %16, %20 : vector<8x128xi1>, vector<8x128xf32>
    %cst_22 = arith.constant dense<0.000000e+00> : vector<8x128xf32>
    %22 = tpu.matmul %21, %6, %cst_22 {dimension_numbers = #tpu.dot_dimension_numbers<[1], [0], [0], [1], [0, 0, 1, 1], [], []>} : vector<8x128xf32>, vector<128x128xf32>, vector<8x128xf32> -> vector<8x128xf32>
    %23 = vector.broadcast %1 : vector<1x128xf32> to vector<8x128xf32>
    %24 = arith.addf %22, %23 : vector<8x128xf32>
    %cst_23 = arith.constant 0.000000e+00 : f32
    %25 = vector.broadcast %cst_23 : f32 to vector<8x128xf32>
    %26 = arith.cmpf ogt, %24, %25 : vector<8x128xf32>
    %cst_24 = arith.constant 0.00999999977 : f32
    %27 = vector.broadcast %cst_24 : f32 to vector<8x128xf32>
    %28 = arith.mulf %27, %24 : vector<8x128xf32>
    %29 = arith.select %26, %24, %28 : vector<8x128xi1>, vector<8x128xf32>
    %cst_25 = arith.constant dense<0.000000e+00> : vector<8x128xf32>
    %30 = tpu.matmul %29, %8, %cst_25 {dimension_numbers = #tpu.dot_dimension_numbers<[1], [0], [0], [1], [0, 0, 1, 1], [], []>} : vector<8x128xf32>, vector<128x128xf32>, vector<8x128xf32> -> vector<8x128xf32>
    %31 = vector.broadcast %5 : vector<1x128xf32> to vector<8x128xf32>
    %32 = arith.addf %30, %31 : vector<8x128xf32>
    %33 = vector.extract_strided_slice %32 {offsets = [0, 0], sizes = [8, 16], strides = [1, 1]} : vector<8x128xf32> to vector<8x16xf32>
    %34 = vector.extract_strided_slice %32 {offsets = [0, 16], sizes = [8, 16], strides = [1, 1]} : vector<8x128xf32> to vector<8x16xf32>
    %cst_26 = arith.constant 5.000000e-01 : f32
    %35 = vector.broadcast %cst_26 : f32 to vector<8x16xf32>
    %36 = arith.mulf %35, %34 : vector<8x16xf32>
    %37 = math.exp %36 : vector<8x16xf32>
    %c0_27 = arith.constant 0 : index
    %c0_28 = arith.constant 0 : index
    %38 = vector.load %arg2[%c0_27, %c0_28] : memref<8x16xf32, #tpu.memory_space<vmem>>, vector<8x16xf32>
    %39 = arith.mulf %38, %37 : vector<8x16xf32>
    %40 = arith.addf %39, %33 : vector<8x16xf32>
    %c0_29 = arith.constant 0 : index
    %c0_30 = arith.constant 0 : index
    %41 = vector.load %arg6[%c0_29, %c0_30] : memref<16x128xf32, #tpu.memory_space<vmem>>, vector<16x128xf32>
    %cst_31 = arith.constant dense<0.000000e+00> : vector<8x128xf32>
    %42 = tpu.matmul %40, %41, %cst_31 {dimension_numbers = #tpu.dot_dimension_numbers<[1], [0], [0], [1], [0, 0, 1, 1], [], []>} : vector<8x16xf32>, vector<16x128xf32>, vector<8x128xf32> -> vector<8x128xf32>
    %43 = arith.addf %42, %10 : vector<8x128xf32>
    %44 = vector.broadcast %2 : vector<1x128xf32> to vector<8x128xf32>
    %45 = arith.addf %43, %44 : vector<8x128xf32>
    %cst_32 = arith.constant 0.000000e+00 : f32
    %46 = vector.broadcast %cst_32 : f32 to vector<8x128xf32>
    %47 = arith.cmpf ogt, %45, %46 : vector<8x128xf32>
    %cst_33 = arith.constant 0.00999999977 : f32
    %48 = vector.broadcast %cst_33 : f32 to vector<8x128xf32>
    %49 = arith.mulf %48, %45 : vector<8x128xf32>
    %50 = arith.select %47, %45, %49 : vector<8x128xi1>, vector<8x128xf32>
    %cst_34 = arith.constant dense<0.000000e+00> : vector<8x128xf32>
    %51 = tpu.matmul %50, %7, %cst_34 {dimension_numbers = #tpu.dot_dimension_numbers<[1], [0], [0], [1], [0, 0, 1, 1], [], []>} : vector<8x128xf32>, vector<128x128xf32>, vector<8x128xf32> -> vector<8x128xf32>
    %52 = vector.broadcast %3 : vector<1x128xf32> to vector<8x128xf32>
    %53 = arith.addf %51, %52 : vector<8x128xf32>
    %cst_35 = arith.constant 0.000000e+00 : f32
    %54 = vector.broadcast %cst_35 : f32 to vector<8x128xf32>
    %55 = arith.cmpf ogt, %53, %54 : vector<8x128xf32>
    %cst_36 = arith.constant 0.00999999977 : f32
    %56 = vector.broadcast %cst_36 : f32 to vector<8x128xf32>
    %57 = arith.mulf %56, %53 : vector<8x128xf32>
    %58 = arith.select %55, %53, %57 : vector<8x128xi1>, vector<8x128xf32>
    %59 = arith.truncf %58 : vector<8x128xf32> to vector<8x128xbf16>
    %c0_37 = arith.constant 0 : index
    %c0_38 = arith.constant 0 : index
    %60 = vector.load %arg7[%c0_37, %c0_38] : memref<128x1024xbf16, #tpu.memory_space<vmem>>, vector<128x1024xbf16>
    %cst_39 = arith.constant dense<0.000000e+00> : vector<8x1024xf32>
    %61 = tpu.matmul %59, %60, %cst_39 {dimension_numbers = #tpu.dot_dimension_numbers<[1], [0], [0], [1], [0, 0, 1, 1], [], []>} : vector<8x128xbf16>, vector<128x1024xbf16>, vector<8x1024xf32> -> vector<8x1024xf32>
    %62 = vector.broadcast %4 : vector<1x1024xf32> to vector<8x1024xf32>
    %63 = arith.addf %61, %62 : vector<8x1024xf32>
    %cst_40 = arith.constant 0.000000e+00 : f32
    %64 = vector.broadcast %cst_40 : f32 to vector<8x1024xf32>
    %65 = arith.cmpf ogt, %63, %64 : vector<8x1024xf32>
    %cst_41 = arith.constant 0.00999999977 : f32
    %66 = vector.broadcast %cst_41 : f32 to vector<8x1024xf32>
    %67 = arith.mulf %66, %63 : vector<8x1024xf32>
    %68 = arith.select %65, %63, %67 : vector<8x1024xi1>, vector<8x1024xf32>
    %c0_42 = arith.constant 0 : index
    %c0_43 = arith.constant 0 : index
    %69 = vector.load %arg9[%c0_42, %c0_43] : memref<8x1024xf32, #tpu.memory_space<vmem>>, vector<8x1024xf32>
    tpu.vector_store %arg9[%c0_42, %c0_43], %68 {strides = array<i32>} : memref<8x1024xf32, #tpu.memory_space<vmem>>, vector<8x1024xf32>,
    %c0_44 = arith.constant 0 : index
    %c0_45 = arith.constant 0 : index
    %70 = vector.load %arg10[%c0_44, %c0_45] : memref<8x128xf32, #tpu.memory_space<vmem>>, vector<8x128xf32>
    tpu.vector_store %arg10[%c0_44, %c0_45], %32 {strides = array<i32>} : memref<8x128xf32, #tpu.memory_space<vmem>>, vector<8x128xf32>,
    return
  }
  func.func @transform_0(%arg0: i32) -> (i32, i32) {
    %c0_i32 = arith.constant 0 : i32
    %c0_i32_0 = arith.constant 0 : i32
    return %arg0, %c0_i32 : i32, i32
  }
  func.func @transform_1(%arg0: i32) -> (i32, i32) {
    %c0_i32 = arith.constant 0 : i32
    %c0_i32_0 = arith.constant 0 : i32
    return %arg0, %c0_i32 : i32, i32
  }
  func.func @transform_2(%arg0: i32) -> (i32, i32) {
    %c0_i32 = arith.constant 0 : i32
    %c0_i32_0 = arith.constant 0 : i32
    return %arg0, %c0_i32 : i32, i32
  }
  func.func @transform_3(%arg0: i32) -> (i32, i32) {
    %c0_i32 = arith.constant 0 : i32
    %c0_i32_0 = arith.constant 0 : i32
    %c0_i32_1 = arith.constant 0 : i32
    return %c0_i32, %c0_i32_0 : i32, i32
  }
  func.func @transform_4(%arg0: i32) -> (i32, i32) {
    %c0_i32 = arith.constant 0 : i32
    %c0_i32_0 = arith.constant 0 : i32
    %c0_i32_1 = arith.constant 0 : i32
    return %c0_i32, %c0_i32_0 : i32, i32
  }
  func.func @transform_5(%arg0: i32) -> (i32, i32) {
    %c0_i32 = arith.constant 0 : i32
    %c0_i32_0 = arith.constant 0 : i32
    %c0_i32_1 = arith.constant 0 : i32
    return %c0_i32, %c0_i32_0 : i32, i32
  }
  func.func @transform_6(%arg0: i32) -> (i32, i32) {
    %c0_i32 = arith.constant 0 : i32
    %c0_i32_0 = arith.constant 0 : i32
    %c0_i32_1 = arith.constant 0 : i32
    return %c0_i32, %c0_i32_0 : i32, i32
  }
  func.func @transform_7(%arg0: i32) -> (i32, i32) {
    %c0_i32 = arith.constant 0 : i32
    %c0_i32_0 = arith.constant 0 : i32
    %c0_i32_1 = arith.constant 0 : i32
    return %c0_i32, %c0_i32_0 : i32, i32
  }
  func.func @transform_8(%arg0: i32) -> (i32, i32) {
    %c0_i32 = arith.constant 0 : i32
    %c0_i32_0 = arith.constant 0 : i32
    return %arg0, %c0_i32 : i32, i32
  }
  func.func @transform_9(%arg0: i32) -> (i32, i32) {
    %c0_i32 = arith.constant 0 : i32
    %c0_i32_0 = arith.constant 0 : i32
    return %arg0, %c0_i32 : i32, i32
  }
}

</mosaic_0001>

<bundles_post_ra>
// kernel: tpu_custom_call.1
= control target key start
LH: loop header
LB: loop body
LE: loop exit
PB: predicated region body
PF: predicated region fallthrough
CT: control target
= control target key end

     0   :  { %s3948_s0 = inlined_call_operand.hbm [shape: bf16[16,1024], index: 0, kind: input, shape index: {}]   ;;  %s3949_s1 = inlined_call_operand.hbm [shape: f32[16,16], index: 1, kind: input, shape index: {}]   ;;  %s3950_s2 = inlined_call_operand.hbm [shape: f32[16,256], index: 2, kind: input, shape index: {}]   ;;  %s3951_s3 = inlined_call_operand.hbm [shape: bf16[1024,128], index: 3, kind: input, shape index: {}]   ;;  %s3952_s4 = inlined_call_operand.hbm [shape: f32[128,384], index: 4, kind: input, shape index: {}]   ;;  %s3953_s5 = inlined_call_operand.vmem [shape: f32[16,128], index: 5, kind: input, shape index: {}]   ;;  %s3954_s6 = inlined_call_operand.hbm [shape: bf16[128,1024], index: 6, kind: input, shape index: {}]   ;;  %s3955_s7 = inlined_call_operand.hbm [shape: f32[1,1664], index: 7, kind: input, shape index: {}]   ;;  %s3956_s8 = inlined_call_operand.hbm [shape: f32[16,1024], index: 8, kind: output, shape index: {0}]   ;;  %s3957_s9 = inlined_call_operand.hbm [shape: f32[16,128], index: 9, kind: output, shape index: {1}]  }
   0x1   :  { %3979 = sst [smem:[#allocation29_spill]] %s3949_s1 }
   0x2   :  { %3980 = sst [smem:[#allocation30_spill]] %s3951_s3 }
   0x3   :  { %3981 = sst [smem:[#allocation31_spill]] %s3954_s6 }
   0x4   :  { %3982 = sst [smem:[#allocation32_spill]] %s3956_s8 }
   0x5   :  { %3983 = sst [smem:[#allocation33_spill]] %s3957_s9 }
   0x6   :  { %15 = vsyncpa [#allocation3], 0 }
   0x7   :  { %17 = vsyncpa [#allocation3 + $0x1], 0 }
   0x8   :  { %18 = vsyncpa [#allocation6], 0 }
   0x9   :  { %20 = vsyncpa [#allocation6 + $0x1], 0 }
   0xa   :  { %21 = vsyncpa [#allocation9], 0 }
   0xb   :  { %22 = vsyncpa [#allocation12], 0 }
   0xc   :  { %23 = vsyncpa [#allocation4], 0 }
   0xd   :  { %25 = vsyncpa [#allocation4 + $0x1], 0 }
   0xe   :  { %26 = vsyncpa [#allocation16], 0 }
   0xf   :  { %28 = vsyncpa [#allocation16 + $0x1], 0  ;;  %s3505_s30 = smov 0   ;;  %s3507_s10 = smov 0  }
  0x10   :  { %s3509_s11 = smov 0   ;;  %s3511_s12 = smov 0  }
  0x11 LB: > { %3984 = sst [smem:[#allocation23_spill]] %s3421_s30  ;;  %s3435_s13 = smov [#allocation8]   ;;  %s3433_s12 = sphi %s3511_s12, %s4020_s12   ;;  %s3429_s11 = sphi %s3509_s11, %s4022_s11   ;;  %s3425_s10 = sphi %s3507_s10, %s4024_s10   ;;  %s3421_s30 = sphi %s3505_s30, %s4023_s30  }
  0x12   : > { %3985 = sst [smem:[#allocation24_spill]] %s3429_s11  ;;  %s286_s14 = sshll.u32 %s3435_s13, 4  ;;  %s3531_s14 = int_to_ptr.vmem [resolvable:$true] %s286_s14 }
  0x13   : > { %s3526_s15 = sadd.s32 4294967295, %s3433_s12   ;;  %p2429_p0 = scmp.ge.s32.totalorder %s3433_s12, 1 }
  0x14   : > { %p3962_p1 = scmp.eq.s32.totalorder %s3526_s15, 0  ;;  %p274_p2 = scmp.lt.s32.totalorder %s3433_s12, 3 }
  0x15   : > { %s3436_s17 = smov [#allocation11]   ;;  %s3988_s3 = sld [smem:[#allocation30_spill]] }
  0x16   : > { %p3533_p3 = pnand %p2429_p0, %p274_p2  ;;  %s315_s18 = sshll.u32 %s3436_s17, 4  ;;  %s3546_s18 = int_to_ptr.vmem [resolvable:$true] %s315_s18 }
  0x18   : > { %s3986_s16 = scalar_select %p3533_p3, 1, 0 }
  0x19   : > { %p2960_p5 = pneg %p3533_p3 }
  0x1b   : > { %p3542_p6 = pnand %p2960_p5, %p3962_p1  ;;  %s3121_s22 = scalar_lea.hbm %s3988_s3, 8192 }
  0x1c   : > { %p3122_p7 = scmp.ne.s32.totalorder %s3988_s3, %s3121_s22  ;;  %p3128_p11 = scmp.lt.u32.totalorder %s3121_s22, %s3988_s3 }
  0x1d   : > { %s3987_s19 = scalar_select %p3542_p6, 1, 0 }
  0x1e   : > { %p3556_p8 = pneg %p3542_p6 }
  0x20   : > { %s3989_s25 = scalar_select %p3556_p8, 1, 0 }
  0x21   : > { %p3124_p9 = pnand %p3556_p8, %p3122_p7 }
  0x23   : > { %p3125_p10 = pneg %p3124_p9 }
  0x25   : > { %p3130_p12 = pnand %p3128_p11, %p3125_p10 }
  0x27   : > { %3133 = shalt.err (!%p3130_p12)
}
  0x28   : > { %s3134_s28 = scalar_lea.vmem %s3531_s14, 8192  ;;  %p3142_p5 = scmp.lt.s32.totalorder %s3531_s14, %s3531_s14 }
  0x29   : > { %p3135_p13 = scmp.ne.s32.totalorder %s3531_s14, %s3134_s28  ;;  %p3143_p4 = scmp.lt.s32.totalorder %s3134_s28, %s3134_s28 }
  0x2b   : > { %p3137_p0 = pnand %p3135_p13, %p3556_p8  ;;  %p3144_p7 = por %p3143_p4, %p3142_p5 }
  0x2d   : > { %p3138_p2 = pneg %p3137_p0 }
  0x2f   : > { %p3145_p9 = pnand %p3144_p7, %p3138_p2 }
  0x31   : > { %3148 = shalt.err (!%p3145_p9)
}
  0x32   : > { %s3437_s29 = smov 64   ;;  %s3438_s13 = smov 4  }
  0x33   : > { %2963 = dma.hbm_to_vmem [thread:$0]  (!%p3542_p6), %s3988_s3, 8192, %s3531_s14, [#allocation9], %s3437_s29, %s3437_s29, %s3438_s13  }
  0x34   : > { %s3990_s6 = sld [smem:[#allocation31_spill]] }
  0x3a   : > { %s3149_s23 = scalar_lea.hbm %s3990_s6, 8192 }
  0x3b   : > { %p3150_p4 = scmp.ne.s32.totalorder %s3990_s6, %s3149_s23  ;;  %p3156_p12 = scmp.lt.u32.totalorder %s3149_s23, %s3990_s6 }
  0x3d   : > { %p3152_p10 = pnand %p3150_p4, %p3556_p8 }
  0x3f   : > { %p3153_p11 = pneg %p3152_p10 }
  0x41   : > { %p3158_p13 = pnand %p3156_p12, %p3153_p11 }
  0x43   : > { %3161 = shalt.err (!%p3158_p13)
}
  0x44   : > { %s3162_s14 = scalar_lea.vmem %s3546_s18, 8192  ;;  %p3170_p7 = scmp.lt.s32.totalorder %s3546_s18, %s3546_s18 }
  0x45   : > { %p3163_p0 = scmp.ne.s32.totalorder %s3546_s18, %s3162_s14  ;;  %p3171_p9 = scmp.lt.s32.totalorder %s3162_s14, %s3162_s14 }
  0x47   : > { %p3165_p2 = pnand %p3163_p0, %p3556_p8  ;;  %p3172_p4 = por %p3171_p9, %p3170_p7 }
  0x49   : > { %p3166_p5 = pneg %p3165_p2 }
  0x4b   : > { %p3173_p10 = pnand %p3172_p4, %p3166_p5 }
  0x4d   : > { %3176 = shalt.err (!%p3173_p10)
}
  0x4e   : > { %s3439_s29 = smov 512   ;;  %s3440_s13 = smov 32  }
  0x4f   : > { %2969 = dma.hbm_to_vmem [thread:$0]  (!%p3542_p6), %s3990_s6, 8192, %s3546_s18, [#allocation12], %s3439_s29, %s3439_s29, %s3440_s13  }
  0x50   : > { %s2428_s21 = sadd.s32 4294967294, %s3433_s12   ;;  %s3602_s22 = sadd.s32 1, %s3433_s12  }
  0x51   : > { %3991 = sst [smem:[#allocation25_spill]] %s3602_s22  ;;  %s38_s23 = ssub.s32 %s3433_s12, %s3602_s22 }
  0x52   : > { %s41_s24 = sadd.s32 1, %s3429_s11  ;;  %p39_p11 = scmp.eq.s32.totalorder %s38_s23, 0 }
  0x53   : > { %p48_p12 = scmp.ne.s32.totalorder %s3429_s11, %s3425_s10  ;;  %p49_p13 = scmp.eq.s32.totalorder %s3433_s12, 0 }
  0x54   : > { %p54_p0 = scmp.ne.s32.totalorder %s3425_s10, %s3421_s30  ;;  %p235_p7 = scmp.eq.s32.totalorder %s3526_s15, 1 }
  0x55   : > { %s3613_s26 = scalar_select %p39_p11, %s3429_s11, %s41_s24  }
  0x56   : > { %p50_p2 = por %p49_p13, %p48_p12  ;;  %p3617_p5 = por %p3962_p1, %p54_p0 }
  0x57   : > { %3992 = sst [smem:[#allocation26_spill]] %s3613_s26  ;;  %p241_p9 = scmp.eq.s32.totalorder %s2428_s21, 1 }
  0x58   : > { %s3993_s27 = scalar_select %p3617_p5, 1, 0 }
  0x59   : > { %p2994_p4 = scmp.lt.s32.totalorder %s3433_s12, 2  ;;  %s3624_s18 = sand.u32 1, %s3429_s11  }
  0x5a   : > { %p3626_p10 = por %p235_p7, %p48_p12  ;;  %p3630_p3 = por %p241_p9, %p54_p0 }
  0x5b   : > { %p3634_p11 = pnand %p2994_p4, %p50_p2  ;;  %s359_s13 = sand.u32 1, %s3433_s12  }
  0x5c   : > { %s3994_s28 = scalar_select %p3626_p10, 1, 0 }
  0x5d   : > { %s3996_s14 = scalar_select %p3630_p3, 1, 0 }
  0x5e   : > { %3995 = sst [smem:[#allocation27_spill]] %s3994_s28  ;;  %s2438_s17 = sshll.u32 %s3624_s18, 3 }
  0x5f   : > { %3997 = sst [smem:[#allocation28_spill]] %s3996_s14  ;;  %s2439_s20 = sshll.u32 %s3433_s12, 7 }
  0x60   : > { %s3998_s29 = scalar_select %p3634_p11, 1, 0 }
  0x61   : > { %s363_s21 = scalar_lea.vmem [#allocation5], %s2438_s17  ;;  %s3999_s1 = sld [smem:[#allocation29_spill]] }
  0x62   : > { %s370_s23 = sshll.u32 %s363_s21, 4  ;;  %s3648_s26 = scalar_lea.sflag [#allocation6], %s359_s13  ;;  %s3646_s23 = int_to_ptr.vmem [resolvable:$true] %s370_s23 }
  0x63   : > { %p3654_p13 = pneg %p3634_p11 }
  0x65   : > { %s4000_s22 = scalar_select %p3654_p13, 1, 0 }
  0x67   : > { %s3644_s6 = scalar_lea.hbm %s3999_s1, %s2439_s20  ;;  %s3182_s20 = scalar_lea.hbm %s3999_s1, 256 }
  0x68   : > { %s3177_s11 = scalar_lea.hbm %s3644_s6, 128  ;;  %p3183_p7 = scmp.lt.u32.totalorder %s3644_s6, %s3999_s1 }
  0x69   : > { %p3178_p12 = scmp.ne.s32.totalorder %s3644_s6, %s3177_s11  ;;  %p3184_p9 = scmp.lt.u32.totalorder %s3182_s20, %s3177_s11 }
  0x6a   : > { %p3186_p1 = scmp.lt.u32.totalorder %s3177_s11, %s3644_s6 }
  0x6b   : > { %p3180_p0 = pnand %p3654_p13, %p3178_p12  ;;  %p3185_p4 = por %p3184_p9, %p3183_p7 }
  0x6d   : > { %p3181_p2 = pneg %p3180_p0  ;;  %p3187_p3 = por %p3186_p1, %p3185_p4 }
  0x6f   : > { %p3188_p10 = pnand %p3187_p3, %p3181_p2 }
  0x71   : > { %3191 = shalt.err (!%p3188_p10)
}
  0x72   : > { %s3192_s13 = scalar_lea.vmem %s3646_s23, 128  ;;  %s3441_s3 = smov [#allocation5]  }
  0x73   : > { %p3193_p12 = scmp.ne.s32.totalorder %s3646_s23, %s3192_s13  ;;  %s3197_s17 = sshll.u32 %s3441_s3, 4  ;;  %s3198_s17 = int_to_ptr.vmem [resolvable:$false] %s3197_s17 }
  0x74   : > { %s3199_s21 = scalar_lea.vmem %s3198_s17, 256  ;;  %p3200_p6 = scmp.lt.s32.totalorder %s3646_s23, %s3198_s17 }
  0x75   : > { %p3195_p0 = pnand %p3193_p12, %p3654_p13  ;;  %p3201_p8 = scmp.lt.s32.totalorder %s3199_s21, %s3192_s13 }
  0x77   : > { %p3196_p5 = pneg %p3195_p0  ;;  %p3202_p7 = por %p3201_p8, %p3200_p6 }
  0x79   : > { %p3203_p9 = pnand %p3202_p7, %p3196_p5 }
  0x7b   : > { %3206 = shalt.err (!%p3203_p9)
}
  0x7c   : > { %2979 = dma.hbm_to_vmem [thread:$0]  (!%p3634_p11), %s3644_s6, 128, %s3646_s23, %s3648_s26  }
  0x7d   : > { %s3442_s11 = smov [#allocation10]   ;;  %s3207_s3 = scalar_lea.hbm %s3952_s4, 6144 }
  0x7e   : > { %s299_s20 = sshll.u32 %s3442_s11, 4  ;;  %p3208_p1 = scmp.ne.s32.totalorder %s3952_s4, %s3207_s3  ;;  %s300_s20 = int_to_ptr.vmem [resolvable:$true] %s299_s20 }
  0x7f   : > { %p4001_p3 = scmp.ne.s32.totalorder %s3989_s25, 0  ;;  %p3214_p5 = scmp.lt.u32.totalorder %s3207_s3, %s3952_s4 }
  0x81   : > { %p3210_p6 = pnand %p3208_p1, %p4001_p3 }
  0x83   : > { %p3211_p8 = pneg %p3210_p6 }
  0x85   : > { %p3216_p10 = pnand %p3214_p5, %p3211_p8 }
  0x87   : > { %3219 = shalt.err (!%p3216_p10)
}
  0x88   : > { %s3220_s6 = scalar_lea.vmem %s300_s20, 6144  ;;  %p3228_p0 = scmp.lt.s32.totalorder %s300_s20, %s300_s20 }
  0x89   : > { %p3221_p2 = scmp.ne.s32.totalorder %s300_s20, %s3220_s6  ;;  %p3229_p7 = scmp.lt.s32.totalorder %s3220_s6, %s3220_s6 }
  0x8b   : > { %p3223_p4 = pnand %p3221_p2, %p4001_p3  ;;  %p3230_p9 = por %p3229_p7, %p3228_p0 }
  0x8d   : > { %p3224_p12 = pneg %p3223_p4 }
  0x8f   : > { %p3231_p11 = pnand %p3230_p9, %p3224_p12 }
  0x91   : > { %3234 = shalt.err (!%p3231_p11)
}
  0x92   : > { %s3443_s1 = smov 384   ;;  %s3444_s14 = smov 24  }
  0x93   : > { %p4002_p1 = scmp.ne.s32.totalorder %s3987_s19, 0  ;;  %s3445_s24 = smov [#allocation13]  }
  0x94   : > { %s329_s3 = sshll.u32 %s3445_s24, 4  ;;  %s2435_s17 = sshll.u32 %s3624_s18, 5  ;;  %s330_s3 = int_to_ptr.vmem [resolvable:$true] %s329_s3 }
  0x95   : > { %2966 = dma.hbm_to_vmem [thread:$0]  (!%p4002_p1), %s3952_s4, 6144, %s300_s20, [#allocation9], %s3443_s1, %s3443_s1, %s3444_s14  }
  0x96   : > { %s3235_s6 = scalar_lea.hbm %s3955_s7, 208 }
  0x97   : > { %p3236_p11 = scmp.ne.s32.totalorder %s3955_s7, %s3235_s6  ;;  %p3242_p5 = scmp.lt.u32.totalorder %s3235_s6, %s3955_s7 }
  0x99   : > { %p3238_p6 = pnand %p3236_p11, %p4001_p3 }
  0x9b   : > { %p3239_p8 = pneg %p3238_p6 }
  0x9d   : > { %p3244_p10 = pnand %p3242_p5, %p3239_p8 }
  0x9f   : > { %3247 = shalt.err (!%p3244_p10)
}
  0xa0   : > { %s3248_s20 = scalar_lea.vmem %s330_s3, 208  ;;  %s3255_s1 = scalar_lea.vmem %s330_s3, 224 }
  0xa1   : > { %p3249_p2 = scmp.ne.s32.totalorder %s330_s3, %s3248_s20  ;;  %p3256_p0 = scmp.lt.s32.totalorder %s330_s3, %s330_s3 }
  0xa2   : > { %p3257_p7 = scmp.lt.s32.totalorder %s3255_s1, %s3248_s20 }
  0xa3   : > { %p3251_p4 = pnand %p3249_p2, %p4001_p3 }
  0xa4   : > { %p3258_p9 = por %p3257_p7, %p3256_p0 }
  0xa5   : > { %p3252_p12 = pneg %p3251_p4 }
  0xa7   : > { %p3259_p13 = pnand %p3258_p9, %p3252_p12 }
  0xa9   : > { %3262 = shalt.err (!%p3259_p13)
}
  0xaa   : > { %2972 = dma.hbm_to_vmem [thread:$0]  (!%p4002_p1), %s3955_s7, 208, %s330_s3, [#allocation12]  }
  0xab   : > { %s2602_s9 = sshll.u32 %s3433_s12, 9  ;;  %s344_s23 = scalar_lea.vmem [#allocation2], %s2435_s17 }
  0xac   : > { %s3719_s14 = scalar_lea.hbm %s3948_s0, %s2602_s9  ;;  %s352_s19 = sshll.u32 %s344_s23, 4  ;;  %s3721_s19 = int_to_ptr.vmem [resolvable:$true] %s352_s19 }
  0xad   : > { %s2440_s11 = sshll.u32 %s3624_s18, 4  ;;  %s341_s24 = scalar_lea.sflag [#allocation3], %s3624_s18 }
  0xae   : > { %s3263_s13 = scalar_lea.hbm %s3719_s14, 512  ;;  %p4003_p3 = scmp.ne.s32.totalorder %s4000_s22, 0 }
  0xaf   : > { %p3264_p13 = scmp.ne.s32.totalorder %s3719_s14, %s3263_s13  ;;  %s3268_s6 = scalar_lea.hbm %s3948_s0, 1024 }
  0xb0   : > { %p3269_p6 = scmp.lt.u32.totalorder %s3719_s14, %s3948_s0  ;;  %p3270_p8 = scmp.lt.u32.totalorder %s3268_s6, %s3263_s13 }
  0xb1   : > { %p3266_p1 = pnand %p3264_p13, %p4003_p3  ;;  %p3272_p10 = scmp.lt.u32.totalorder %s3263_s13, %s3719_s14 }
  0xb2   : > { %p3271_p5 = por %p3270_p8, %p3269_p6 }
  0xb3   : > { %p3267_p11 = pneg %p3266_p1 }
  0xb4   : > { %p3273_p2 = por %p3272_p10, %p3271_p5 }
  0xb6   : > { %p3274_p4 = pnand %p3273_p2, %p3267_p11 }
  0xb8   : > { %3277 = shalt.err (!%p3274_p4)
}
  0xb9   : > { %s3278_s17 = scalar_lea.vmem %s3721_s19, 512  ;;  %s3446_s8 = smov [#allocation2]  }
  0xba   : > { %p3279_p12 = scmp.ne.s32.totalorder %s3721_s19, %s3278_s17  ;;  %s3283_s30 = sshll.u32 %s3446_s8, 4  ;;  %s3284_s30 = int_to_ptr.vmem [resolvable:$false] %s3283_s30 }
  0xbb   : > { %s3285_s9 = scalar_lea.vmem %s3284_s30, 1024  ;;  %p3286_p9 = scmp.lt.s32.totalorder %s3721_s19, %s3284_s30 }
  0xbc   : > { %p3281_p0 = pnand %p3279_p12, %p4003_p3  ;;  %p3287_p13 = scmp.lt.s32.totalorder %s3285_s9, %s3278_s17 }
  0xbe   : > { %p3282_p7 = pneg %p3281_p0  ;;  %p3288_p1 = por %p3287_p13, %p3286_p9 }
  0xc0   : > { %p3289_p6 = pnand %p3288_p1, %p3282_p7 }
  0xc2   : > { %3292 = shalt.err (!%p3289_p6)
}
  0xc3   : > { %p4004_p11 = scmp.ne.s32.totalorder %s3998_s29, 0  ;;  %s2603_s25 = sshll.u32 %s3433_s12, 8 }
  0xc4   : > { %s3750_s13 = scalar_lea.hbm %s3950_s2, %s2603_s25  ;;  %s381_s3 = scalar_lea.vmem [#allocation7], %s2440_s11 }
  0xc5   : > { %2976 = dma.hbm_to_vmem [thread:$0]  (!%p4004_p11), %s3719_s14, 512, %s3721_s19, %s341_s24  }
  0xc6   : > { %s389_s21 = sshll.u32 %s381_s3, 4  ;;  %s3293_s6 = scalar_lea.hbm %s3750_s13, 256  ;;  %s390_s21 = int_to_ptr.vmem [resolvable:$true] %s389_s21 }
  0xc7   : > { %p3294_p8 = scmp.ne.s32.totalorder %s3750_s13, %s3293_s6  ;;  %s3298_s24 = scalar_lea.hbm %s3950_s2, 512 }
  0xc8   : > { %p3299_p2 = scmp.lt.u32.totalorder %s3750_s13, %s3950_s2  ;;  %p3300_p4 = scmp.lt.u32.totalorder %s3298_s24, %s3293_s6 }
  0xc9   : > { %p3296_p5 = pnand %p3294_p8, %p4003_p3  ;;  %p3302_p0 = scmp.lt.u32.totalorder %s3293_s6, %s3750_s13 }
  0xca   : > { %p3301_p12 = por %p3300_p4, %p3299_p2 }
  0xcb   : > { %p3297_p10 = pneg %p3296_p5 }
  0xcc   : > { %p3303_p7 = por %p3302_p0, %p3301_p12 }
  0xce   : > { %p3304_p9 = pnand %p3303_p7, %p3297_p10 }
  0xd0   : > { %3307 = shalt.err (!%p3304_p9)
}
  0xd1   : > { %s3308_s18 = scalar_lea.vmem %s390_s21, 256  ;;  %s3447_s11 = smov [#allocation7]  }
  0xd2   : > { %p3309_p13 = scmp.ne.s32.totalorder %s390_s21, %s3308_s18  ;;  %s3313_s17 = sshll.u32 %s3447_s11, 4  ;;  %s3314_s17 = int_to_ptr.vmem [resolvable:$false] %s3313_s17 }
  0xd3   : > { %s3315_s8 = scalar_lea.vmem %s3314_s17, 512  ;;  %p3316_p8 = scmp.lt.s32.totalorder %s390_s21, %s3314_s17 }
  0xd4   : > { %p3311_p1 = pnand %p3309_p13, %p4003_p3  ;;  %p3317_p5 = scmp.lt.s32.totalorder %s3315_s8, %s3308_s18 }
  0xd6   : > { %p3312_p6 = pneg %p3311_p1  ;;  %p3318_p11 = por %p3317_p5, %p3316_p8 }
  0xd8   : > { %p3319_p2 = pnand %p3318_p11, %p3312_p6 }
  0xda   : > { %3322 = shalt.err (!%p3319_p2)
}
  0xdb   : > { %p4005_p4 = scmp.ne.s32.totalorder %s3998_s29, 0  ;;  %p4006_p10 = scmp.ne.s32.totalorder %s3986_s16, 0 }
  0xdc   : > { %s3775_s22 = sand.u32 (!%p4006_p10), 1, %s3425_s10   ;;  %p4007_p3 = scmp.ne.s32.totalorder (!%p4006_p10), %s3993_s27, 0 }
  0xdd   : > { %2982 = dma.hbm_to_vmem [thread:$0]  (!%p4005_p4), %s3750_s13, 256, %s390_s21, %s3648_s26  }
  0xde   : > { %398 = sbr.rel (%p4006_p10) target bundleno = 1796 (0x704), region = 52  ;;  %s2444_s30 = sshll.u32 (!%p4006_p10), %s3775_s22, 5 }
  0xdf   : > { %s401_s9 = scalar_lea.sflag (!%p4006_p10), [#allocation3], %s3775_s22  ;;  %s3779_s25 = scalar_lea.vmem (!%p4006_p10), [#allocation2], %s2444_s30 }
  0xe5   : > { %3396 = dma.done.wait (%p4007_p3), %s401_s9, 512  }
  0xe6   : > { %3398 = vsyncadd (%p4007_p3), %s401_s9, 4294966784  ;;  %s409_s16 = sand.u32 1, %s3526_s15   ;;  %s2445_s26 = sshll.u32 %s3775_s22, 3 }
  0xe7   : > { %s410_s29 = scalar_lea.sflag [#allocation6], %s409_s16  ;;  %s3789_s28 = scalar_lea.vmem [#allocation5], %s2445_s26 }
  0xe8   : > { %3400 = dma.done.wait (%p4007_p3), %s410_s29, 384  }
  0xe9   : > { %3402 = vsyncadd (%p4007_p3), %s410_s29, 4294966912  ;;  %s2446_s23 = sshll.u32 %s3775_s22, 4  ;;  %p4008_p11 = scmp.eq.s32.totalorder %s3526_s15, 0 }
  0xea   : > { %s3796_s13 = scalar_lea.vmem [#allocation7], %s2446_s23 }
  0xeb   : > { %3404 = dma.done.wait (%p4008_p11), [#allocation9], 14336   ;;  %p4009_p12 = pmov %p4008_p11 }
  0xec   : > { %p4010_p0 = pmov %p4008_p11 }
  0xed   : > { %3406 = vsyncadd (%p4009_p12), [#allocation9], 4294952960 }
  0xee   : > { %3408 = dma.done.wait (%p4010_p0), [#allocation12], 8400   ;;  %p4011_p7 = pmov %p4010_p0 }
  0xef   : > { %v3047_v0 = vld [vmem:[#allocation8 + $0x40] sm:$0xff]   ;;  %v3051_v4 = vld [vmem:[#allocation8 + $0x48] sm:$0xff]   ;;  %v3055_v8 = vld [vmem:[#allocation8 + $0x50] sm:$0xff]   ;;  %vm3449_vm0 = vmmov 0   ;;  %s3839_s27 = scalar_lea.vmem [#allocation15], %s2445_s26  ;;  %s3451_s19 = smov 112  }
  0xf0   : > { %3410 = vsyncadd (%p4011_p7), [#allocation12], 4294958896  ;;  %v3048_v1 = vld [vmem:[#allocation8 + $0xc0] sm:$0xff]   ;;  %2605 = vmatprep.subr.bf16.mxu0 %v3047_v0  ;;  %v3052_v5 = vld [vmem:[#allocation8 + $0xc8] sm:$0xff]   ;;  %vm1426_vm3 = vcmask 130048   ;;  %s4012_s24 = sld [smem:[#allocation27_spill]] }
  0xf1   : > { %v3049_v2 = vld [vmem:[#allocation8] sm:$0xff]   ;;  %2627 = vmatprep.subr.bf16.mxu1 %v3048_v1  ;;  %v3053_v6 = vld [vmem:[#allocation8 + $0x8] sm:$0xff]   ;;  %v3056_v9 = vld [vmem:[#allocation8 + $0xd0] sm:$0xff]   ;;  %s2599_s20 = sshll.u32 %s3526_s15, 7  ;;  %s2245_s1 = sshll.u32 %s3839_s27, 4  ;;  %s2246_s1 = int_to_ptr.vmem [resolvable:$true] %s2245_s1 }
  0xf2   : > { %v3050_v3 = vld [vmem:[#allocation8 + $0x80] sm:$0xff]   ;;  %2606 = vmatpush3.bf16.msra.mxu0 %v3049_v2  ;;  %v3054_v7 = vld [vmem:[#allocation8 + $0x88] sm:$0xff]   ;;  %v3057_v10 = vld [vmem:[#allocation8 + $0x10] sm:$0xff]   ;;  %s4013_s17 = sld [smem:[#allocation33_spill]]  ;;  %s2218_s30 = scalar_lea.sflag [#allocation16], %s3775_s22 }
  0xf3   : > { %2628 = vmatpush3.bf16.msra.mxu1 %v3050_v3  ;;  %2607 = vmatprep.subr.bf16.mxu0 %v3051_v4  ;;  %v3058_v11 = vld [vmem:[#allocation8 + $0x90] sm:$0xff]   ;;  %v3059_v12 = vld [vmem:[#allocation8 + $0x58] sm:$0xff]   ;;  %v3063_v16 = vld [vmem:[#allocation8 + $0x60] sm:$0xff]   ;;  %s3323_s9 = scalar_lea.vmem %s2246_s1, 128 }
  0xf4   : > { %2629 = vmatprep.subr.bf16.mxu1 %v3052_v5  ;;  %v3060_v13 = vld [vmem:[#allocation8 + $0xd8] sm:$0xff]   ;;  %v3064_v17 = vld [vmem:[#allocation8 + $0xe0] sm:$0xff]   ;;  %v3067_v20 = vld [vmem:[#allocation8 + $0x68] sm:$0xff]   ;;  %p3324_p9 = scmp.ne.s32.totalorder %s2246_s1, %s3323_s9 }
  0xf5   : > { %v3061_v14 = vld [vmem:[#allocation8 + $0x18] sm:$0xff]   ;;  %v3065_v18 = vld [vmem:[#allocation8 + $0x20] sm:$0xff]   ;;  %v3068_v21 = vld [vmem:[#allocation8 + $0xe8] sm:$0xff]  }
  0xf6   : > { %2608 = vmatpush3.bf16.msra.mxu0 %v3053_v6  ;;  %v3062_v15 = vld [vmem:[#allocation8 + $0x98] sm:$0xff]   ;;  %v3066_v19 = vld [vmem:[#allocation8 + $0xa0] sm:$0xff]   ;;  %v3069_v22 = vld [vmem:[#allocation8 + $0x28] sm:$0xff]   ;;  %p4014_p13 = scmp.ne.s32.totalorder %s4012_s24, 0 }
  0xf7   : > { %2630 = vmatpush3.bf16.msra.mxu1 %v3054_v7  ;;  %2609 = vmatprep.subr.bf16.mxu0 %v3055_v8  ;;  %v3070_v23 = vld [vmem:[#allocation8 + $0xa8] sm:$0xff]   ;;  %v3071_v24 = vld [vmem:[#allocation8 + $0x70] sm:$0xff]   ;;  %v3075_v28 = vld [vmem:[#allocation8 + $0x78] sm:$0xff]  }
  0xf8   : > { %2631 = vmatprep.subr.bf16.mxu1 %v3056_v9  ;;  %v3072_v25 = vld [vmem:[#allocation8 + $0xf0] sm:$0xff]   ;;  %v3076_v29 = vld [vmem:[#allocation8 + $0xf8] sm:$0xff]   ;;  %v3083_v38 = vld [vmem:[#allocation8 + $0x140] sm:$0xff]   ;;  %s3868_s8 = scalar_lea.hbm %s4013_s17, %s2599_s20  ;;  %p3325_p1 = pnand %p3324_p9, %p4014_p13 }
  0xf9   : > { %v3073_v26 = vld [vmem:[#allocation8 + $0x30] sm:$0xff]   ;;  %v3077_v30 = vld [vmem:[#allocation8 + $0x38] sm:$0xff]   ;;  %v3084_v39 = vld [vmem:[#allocation8 + $0x1c0] sm:$0xff]  }
  0xfa   : > { %2610 = vmatpush3.bf16.msra.mxu0 %v3057_v10  ;;  %v3074_v27 = vld [vmem:[#allocation8 + $0xb0] sm:$0xff]   ;;  %v3078_v31 = vld [vmem:[#allocation8 + $0xb8] sm:$0xff]   ;;  %v3085_v40 = vld [vmem:[#allocation8 + $0x100] sm:$0xff]   ;;  %p3326_p6 = pneg %p3325_p1 }
  0xfb   : > { %2632 = vmatpush3.bf16.msra.mxu1 %v3058_v11  ;;  %2611 = vmatprep.subr.bf16.mxu0 %v3059_v12  ;;  %v545_v32 = vld [vmem:[%s3779_s25] sm:$0xff]  ;;  %v546_v33 = vld [vmem:[%s3779_s25 + $0x8] sm:$0xff]  ;;  %v3086_v41 = vld [vmem:[#allocation8 + $0x180] sm:$0xff]  }
  0xfc   : > { %2633 = vmatprep.subr.bf16.mxu1 %v3060_v13  ;;  %v2453_v34 = vcombine.low %v545_v32, %v545_v32  ;;  %v2454_v35 = vcombine.high %v545_v32, %v545_v32  ;;  %v2455_v36 = vcombine.low %v546_v33, %v546_v33  ;;  %v2456_v37 = vcombine.high %v546_v33, %v546_v33  ;;  %v3087_v42 = vld [vmem:[#allocation8 + $0x148] sm:$0xff]   ;;  %v3091_v46 = vld [vmem:[#allocation8 + $0x150] sm:$0xff]   ;;  %v3095_v50 = vld [vmem:[#allocation8 + $0x158] sm:$0xff]  }
  0xfd   : > { %v3088_v43 = vld [vmem:[#allocation8 + $0x1c8] sm:$0xff]   ;;  %v3092_v47 = vld [vmem:[#allocation8 + $0x1d0] sm:$0xff]   ;;  %v3096_v51 = vld [vmem:[#allocation8 + $0x1d8] sm:$0xff]  }
  0xfe   : > { %2612 = vmatpush3.bf16.msra.mxu0 %v3061_v14  ;;  %1121 = vmatprep.mubr.bf16.mxu0 %v2454_v35  ;;  %v3089_v44 = vld [vmem:[#allocation8 + $0x108] sm:$0xff]   ;;  %v3093_v48 = vld [vmem:[#allocation8 + $0x110] sm:$0xff]   ;;  %v3097_v52 = vld [vmem:[#allocation8 + $0x118] sm:$0xff]  }
  0xff   : > { %2634 = vmatpush3.bf16.msra.mxu1 %v3062_v15  ;;  %2613 = vmatprep.subr.bf16.mxu0 %v3063_v16  ;;  %v3090_v45 = vld [vmem:[#allocation8 + $0x188] sm:$0xff]   ;;  %v3094_v49 = vld [vmem:[#allocation8 + $0x190] sm:$0xff]   ;;  %v3098_v53 = vld [vmem:[#allocation8 + $0x198] sm:$0xff]   ;;  %v3448_v15 = vmov 0.0|0.0  }
 0x100   : > { %2635 = vmatprep.subr.bf16.mxu1 %v3064_v17  ;;  %1161 = vmatprep.mubr.bf16.mxu1 %v2456_v37  ;;  %v3099_v54 = vld [vmem:[#allocation8 + $0x160] sm:$0xff]   ;;  %v3103_v58 = vld [vmem:[#allocation8 + $0x168] sm:$0xff]   ;;  %v3107_v62 = vld [vmem:[#allocation8 + $0x170] sm:$0xff]   ;;  %v3450_v37 = vmov 0.0  }
 0x101   : > { %v3100_v55 = vld [vmem:[#allocation8 + $0x1e0] sm:$0xff]   ;;  %v3104_v59 = vld [vmem:[#allocation8 + $0x1e8] sm:$0xff]   ;;  %v3108_v63 = vld [vmem:[#allocation8 + $0x1f0] sm:$0xff]  }
 0x102   : > { %2614 = vmatpush3.bf16.msra.mxu0 %v3065_v18  ;;  %v3101_v56 = vld [vmem:[#allocation8 + $0x120] sm:$0xff]   ;;  %v3105_v60 = vld [vmem:[#allocation8 + $0x128] sm:$0xff]   ;;  %v3109_v0 = vld [vmem:[#allocation8 + $0x130] sm:$0xff]  }
 0x103   : > { %2636 = vmatpush3.bf16.msra.mxu1 %v3066_v19  ;;  %2615 = vmatprep.subr.bf16.mxu0 %v3067_v20  ;;  %v3102_v57 = vld [vmem:[#allocation8 + $0x1a0] sm:$0xff]   ;;  %v3106_v61 = vld [vmem:[#allocation8 + $0x1a8] sm:$0xff]   ;;  %v3110_v1 = vld [vmem:[#allocation8 + $0x1b0] sm:$0xff]  }
 0x104   : > { %2637 = vmatprep.subr.bf16.mxu1 %v3068_v21  ;;  %v3111_v2 = vld [vmem:[#allocation8 + $0x178] sm:$0xff]   ;;  %v547_v6 = vld [vmem:[%s3779_s25 + $0x10] sm:$0xff]  ;;  %v548_v9 = vld [vmem:[%s3779_s25 + $0x18] sm:$0xff]  ;;  %s3453_s25 = smov [#allocation15]  }
 0x105   : > { %v3112_v3 = vld [vmem:[#allocation8 + $0x1f8] sm:$0xff]   ;;  %v2457_v7 = vcombine.low %v547_v6, %v547_v6  ;;  %v2458_v8 = vcombine.high %v547_v6, %v547_v6  ;;  %v2459_v10 = vcombine.low %v548_v9, %v548_v9  ;;  %v2460_v11 = vcombine.high %v548_v9, %v548_v9  ;;  %v495_v12 = vld [vmem:[#allocation10] sm:$0xff]  ;;  %v497_v14 = vld [vmem:[#allocation10 + $0x30] sm:$0xff]  ;;  %s3327_s16 = sshll.u32 %s3453_s25, 4  ;;  %s3328_s16 = int_to_ptr.vmem [resolvable:$false] %s3327_s16 }
 0x106   : > { %2616 = vmatpush3.bf16.msra.mxu0 %v3069_v22  ;;  %v3113_v4 = vld [vmem:[#allocation8 + $0x138] sm:$0xff]   ;;  %v498_v17 = vld [vmem:[#allocation10 + $0x48] sm:$0xff]  ;;  %v499_v19 = vld [vmem:[#allocation10 + $0x60] sm:$0xff]  ;;  %s3329_s26 = scalar_lea.vmem %s3328_s16, 256  ;;  %p3330_p8 = scmp.lt.s32.totalorder %s2246_s1, %s3328_s16 }
 0x107   : > { %2638 = vmatpush3.bf16.msra.mxu1 %v3070_v23  ;;  %2617 = vmatprep.subr.bf16.mxu0 %v3071_v24  ;;  %v3114_v5 = vld [vmem:[#allocation8 + $0x1b8] sm:$0xff]   ;;  %v2863_v18 = vpack.c.bf16 %v498_v17, %v497_v14  ;;  %v501_v22 = vld [vmem:[#allocation10 + $0x90] sm:$0xff]  ;;  %v502_v23 = vld [vmem:[#allocation10 + $0xa8] sm:$0xff]  ;;  %p3331_p5 = scmp.lt.s32.totalorder %s3329_s26, %s3323_s9 }
 0x108   : > { %2639 = vmatprep.subr.bf16.mxu1 %v3072_v25  ;;  %v496_v13 = vld [vmem:[#allocation10 + $0x18] sm:$0xff]  ;;  %v2869_v24 = vpack.c.bf16 %v502_v23, %v501_v22  ;;  %v503_v25 = vld [vmem:[#allocation10 + $0xc0] sm:$0xff]  ;;  %v510_v35 = vld [vmem:[#allocation10 + $0x168] sm:$0xff] }
 0x109   : > { %v2860_v16 = vpack.c.bf16 %v496_v13, %v495_v12  ;;  %v500_v20 = vld [vmem:[#allocation10 + $0x78] sm:$0xff]  ;;  %p3332_p2 = por %p3331_p5, %p3330_p8 }
 0x10a   : > { %2618 = vmatpush3.bf16.msra.mxu0 %v3073_v26  ;;  %v2866_v21 = vpack.c.bf16 %v500_v20, %v499_v19  ;;  %v504_v26 = vld [vmem:[#allocation10 + $0xd8] sm:$0xff]  ;;  %v2525_v20 = vld [vmem:[#allocation13] ss:$0 sm:$0xff] }
 0x10b   : > { %2640 = vmatpush3.bf16.msra.mxu1 %v3074_v27  ;;  %2619 = vmatprep.subr.bf16.mxu0 %v3075_v28  ;;  %v2872_v27 = vpack.c.bf16 %v504_v26, %v503_v25  ;;  %v505_v28 = vld [vmem:[#allocation10 + $0xf0] sm:$0xff]  ;;  %v508_v32 = vld [vmem:[#allocation10 + $0x138] sm:$0xff]  ;;  %v541_v25 = vld [vmem:[#allocation10 + $0x160] sm:$0xff]  ;;  %p3333_p4 = pnand %p3332_p2, %p3326_p6 }
 0x10c   : > { %2641 = vmatprep.subr.bf16.mxu1 %v3076_v29  ;;  %v506_v29 = vld [vmem:[#allocation10 + $0x108] sm:$0xff]  ;;  %v542_v26 = vld [vmem:[#allocation10 + $0x178] sm:$0xff] }
 0x10e   : > { %2620 = vmatpush3.bf16.msra.mxu0 %v3077_v30  ;;  %v2875_v30 = vpack.c.bf16 %v506_v29, %v505_v28  ;;  %v2526_v28 = vld [vmem:[#allocation13 + $0x1] ss:$0 sm:$0xff] }
 0x10f   : > { %2642 = vmatpush3.bf16.msra.mxu1 %v3078_v31  ;;  %2649 = vmatprep.subr.bf16.mxu0 %v3083_v38  ;;  %v507_v31 = vld [vmem:[#allocation10 + $0x120] sm:$0xff]  ;;  %v527_v38 = vld [vmem:[#allocation10 + $0x10] sm:$0xff] }
 0x110   : > { %2671 = vmatprep.subr.bf16.mxu1 %v3084_v39  ;;  %v2878_v33 = vpack.c.bf16 %v508_v32, %v507_v31  ;;  %v528_v39 = vld [vmem:[#allocation10 + $0x28] sm:$0xff] }
 0x111   : > { %1122 = vmatmul.mubr.bf16.vlgmr.msra.gmra.mrb[0].mxu0 %v2453_v34  ;;  %v509_v34 = vld [vmem:[#allocation10 + $0x150] sm:$0xff] }
 0x112   : > { %1162 = vmatmul.mubr.bf16.vlgmr.msra.gmra.mrb[0].mxu1 %v2455_v36  ;;  %2650 = vmatpush3.bf16.msra.mxu0 %v3085_v40  ;;  %v2881_v36 = vpack.c.bf16 %v510_v35, %v509_v34  ;;  %v529_v40 = vld [vmem:[#allocation10 + $0x40] sm:$0xff]  ;;  %v2527_v34 = vld [vmem:[#allocation13 + $0xc] ss:$0 sm:$0xff] }
 0x113   : > { %2672 = vmatpush3.bf16.msra.mxu1 %v3086_v41  ;;  %2651 = vmatprep.subr.bf16.mxu0 %v3087_v42  ;;  %v2884_v41 = vpack.c.bf16 %v528_v39, %v527_v38  ;;  %v530_v42 = vld [vmem:[#allocation10 + $0x58] sm:$0xff] }
 0x114   : > { %2673 = vmatprep.subr.bf16.mxu1 %v3088_v43  ;;  %1201 = vmatprep.mubr.bf16.mxu0 %v2458_v8  ;;  %v2887_v43 = vpack.c.bf16 %v530_v42, %v529_v40  ;;  %v1424_v40 = vld [vmem:[%s3953_s5] sm:$0xff] }
 0x115   : > { %1241 = vmatprep.mubr.bf16.mxu1 %v2460_v11 }
 0x116   : > { %2652 = vmatpush3.bf16.msra.mxu0 %v3089_v44  ;;  %v531_v44 = vld [vmem:[#allocation10 + $0x70] sm:$0xff] }
 0x117   : > { %2674 = vmatpush3.bf16.msra.mxu1 %v3090_v45  ;;  %2653 = vmatprep.subr.bf16.mxu0 %v3091_v46  ;;  %v532_v45 = vld [vmem:[#allocation10 + $0x88] sm:$0xff] }
 0x118   : > { %2675 = vmatprep.subr.bf16.mxu1 %v3092_v47  ;;  %v2890_v46 = vpack.c.bf16 %v532_v45, %v531_v44  ;;  %v533_v47 = vld [vmem:[#allocation10 + $0xa0] sm:$0xff]  ;;  %v513_v45 = vld [vmem:[#allocation10 + $0x38] sm:$0xff] }
 0x119   : > { %v512_v44 = vld [vmem:[#allocation10 + $0x20] sm:$0xff] }
 0x11a   : > { %2654 = vmatpush3.bf16.msra.mxu0 %v3093_v48  ;;  %v534_v48 = vld [vmem:[#allocation10 + $0xb8] sm:$0xff] }
 0x11b   : > { %2676 = vmatpush3.bf16.msra.mxu1 %v3094_v49  ;;  %2655 = vmatprep.subr.bf16.mxu0 %v3095_v50  ;;  %v2893_v49 = vpack.c.bf16 %v534_v48, %v533_v47  ;;  %v535_v50 = vld [vmem:[#allocation10 + $0xd0] sm:$0xff] }
 0x11c   : > { %2677 = vmatprep.subr.bf16.mxu1 %v3096_v51  ;;  %v536_v51 = vld [vmem:[#allocation10 + $0xe8] sm:$0xff]  ;;  %v514_v47 = vld [vmem:[#allocation10 + $0x50] sm:$0xff] }
 0x11d   : > { %v2914_v48 = vpack.c.bf16 %v514_v47, %v513_v45  ;;  %v1603_v47 = vld [vmem:[#allocation11 + $0x68] sm:$0xff] }
 0x11e   : > { %2656 = vmatpush3.bf16.msra.mxu0 %v3097_v52  ;;  %v2896_v52 = vpack.c.bf16 %v536_v51, %v535_v50  ;;  %v516_v50 = vld [vmem:[#allocation10 + $0x80] sm:$0xff] }
 0x11f   : > { %2678 = vmatpush3.bf16.msra.mxu1 %v3098_v53  ;;  %2657 = vmatprep.subr.bf16.mxu0 %v3099_v54  ;;  %v537_v53 = vld [vmem:[#allocation10 + $0x100] sm:$0xff]  ;;  %v538_v54 = vld [vmem:[#allocation10 + $0x118] sm:$0xff] }
 0x120   : > { %2679 = vmatprep.subr.bf16.mxu1 %v3100_v55  ;;  %v2899_v55 = vpack.c.bf16 %v538_v54, %v537_v53  ;;  %v517_v53 = vld [vmem:[#allocation10 + $0x98] sm:$0xff]  ;;  %v518_v54 = vld [vmem:[#allocation10 + $0xb0] sm:$0xff] }
 0x122   : > { %2658 = vmatpush3.bf16.msra.mxu0 %v3101_v56  ;;  %v539_v56 = vld [vmem:[#allocation10 + $0x130] sm:$0xff] }
 0x123   : > { %2680 = vmatpush3.bf16.msra.mxu1 %v3102_v57  ;;  %2659 = vmatprep.subr.bf16.mxu0 %v3103_v58  ;;  %v540_v57 = vld [vmem:[#allocation10 + $0x148] sm:$0xff] }
 0x124   : > { %2681 = vmatprep.subr.bf16.mxu1 %v3104_v59  ;;  %v2902_v58 = vpack.c.bf16 %v540_v57, %v539_v56  ;;  %v519_v56 = vld [vmem:[#allocation10 + $0xc8] sm:$0xff]  ;;  %v520_v57 = vld [vmem:[#allocation10 + $0xe0] sm:$0xff] }
 0x126   : > { %2660 = vmatpush3.bf16.msra.mxu0 %v3105_v60 }
 0x127   : > { %2682 = vmatpush3.bf16.msra.mxu1 %v3106_v61  ;;  %2661 = vmatprep.subr.bf16.mxu0 %v3107_v62  ;;  %v543_v61 = vld [vmem:[%s3796_s13] sm:$0xff] }
 0x128   : > { %2683 = vmatprep.subr.bf16.mxu1 %v3108_v63 }
 0x12a   : > { %2662 = vmatpush3.bf16.msra.mxu0 %v3109_v0 }
 0x12b   : > { %2684 = vmatpush3.bf16.msra.mxu1 %v3110_v1  ;;  %2663 = vmatprep.subr.bf16.mxu0 %v3111_v2 }
 0x12c   : > { %2685 = vmatprep.subr.bf16.mxu1 %v3112_v3 }
 0x12e   : > { %2664 = vmatpush3.bf16.msra.mxu0 %v3113_v4 }
 0x12f   : > { %2686 = vmatpush3.bf16.msra.mxu1 %v3114_v5  ;;  %2859 = vmatprep.subr.bf16.mxu0 %v3448_v15 }
 0x130   : > { %2883 = vmatprep.subr.bf16.mxu1 %v3448_v15 }
 0x131   : > { %1202 = vmatmul.mubr.bf16.vlgmr.msra.gmra.mrb[4].mxu0 %v2457_v7 }
 0x132   : > { %1242 = vmatmul.mubr.bf16.vlgmr.msra.gmra.mrb[4].mxu1 %v2459_v10  ;;  %2861 = vmatpush3.bf16.msra.mxu0 %v2860_v16 }
 0x133   : > { %2862 = vmatprep.subr.bf16.mxu0 %v3448_v15  ;;  %2779 = vmatprep.mubr.msk.f32.mxu0 %vm3449_vm0, %v3450_v37 }
 0x134   : > { %2814 = vmatprep.mubr.msk.f32.mxu1 %vm3449_vm0, %v3450_v37  ;;  %2885 = vmatpush3.bf16.msra.mxu1 %v2884_v41  ;;  %v1425_v41 = vld [vmem:[%s3953_s5 + $0x8] sm:$0xff] }
 0x135   : > { %2886 = vmatprep.subr.bf16.mxu1 %v3448_v15  ;;  %v2908_v42 = vpack.c.bf16 %v1425_v41, %v1424_v40  ;;  %v544_v41 = vld [vmem:[%s3796_s13 + $0x8] sm:$0xff] }
 0x136   : > { %2864 = vmatpush3.bf16.msra.mxu0 %v2863_v18 }
 0x137   : > { %2865 = vmatprep.subr.bf16.mxu0 %v3448_v15 }
 0x138   : > { %2888 = vmatpush3.bf16.msra.mxu1 %v2887_v43  ;;  %v511_v43 = vld [vmem:[#allocation10 + $0x8] sm:$0xff] }
 0x139   : > { %2889 = vmatprep.subr.bf16.mxu1 %v3448_v15 }
 0x13a   : > { %2867 = vmatpush3.bf16.msra.mxu0 %v2866_v21 }
 0x13b   : > { %2868 = vmatprep.subr.bf16.mxu0 %v3448_v15 }
 0x13c   : > { %2891 = vmatpush3.bf16.msra.mxu1 %v2890_v46  ;;  %v2911_v46 = vpack.c.bf16 %v512_v44, %v511_v43 }
 0x13d   : > { %2892 = vmatprep.subr.bf16.mxu1 %v3448_v15 }
 0x13e   : > { %2870 = vmatpush3.bf16.msra.mxu0 %v2869_v24 }
 0x13f   : > { %2871 = vmatprep.subr.bf16.mxu0 %v3448_v15 }
 0x140   : > { %2894 = vmatpush3.bf16.msra.mxu1 %v2893_v49  ;;  %v515_v49 = vld [vmem:[#allocation10 + $0x68] sm:$0xff] }
 0x141   : > { %2895 = vmatprep.subr.bf16.mxu1 %v3448_v15  ;;  %v2917_v51 = vpack.c.bf16 %v516_v50, %v515_v49 }
 0x142   : > { %2873 = vmatpush3.bf16.msra.mxu0 %v2872_v27  ;;  %v2905_v27 = vpack.c.bf16 %v542_v26, %v541_v25  ;;  %v1618_v25 = vld [vmem:[#allocation11 + $0xe0] sm:$0xff] }
 0x143   : > { %2874 = vmatprep.subr.bf16.mxu0 %v3448_v15 }
 0x144   : > { %2897 = vmatpush3.bf16.msra.mxu1 %v2896_v52 }
 0x145   : > { %2898 = vmatprep.subr.bf16.mxu1 %v3448_v15 }
 0x146   : > { %2876 = vmatpush3.bf16.msra.mxu0 %v2875_v30 }
 0x147   : > { %2877 = vmatprep.subr.bf16.mxu0 %v3448_v15 }
 0x148   : > { %2900 = vmatpush3.bf16.msra.mxu1 %v2899_v55  ;;  %v2920_v55 = vpack.c.bf16 %v518_v54, %v517_v53 }
 0x149   : > { %2901 = vmatprep.subr.bf16.mxu1 %v3448_v15 }
 0x14a   : > { %2879 = vmatpush3.bf16.msra.mxu0 %v2878_v33 }
 0x14b   : > { %2880 = vmatprep.subr.bf16.mxu0 %v3448_v15 }
 0x14c   : > { %2903 = vmatpush3.bf16.msra.mxu1 %v2902_v58  ;;  %v2923_v58 = vpack.c.bf16 %v520_v57, %v519_v56  ;;  %v1619_v56 = vld [vmem:[#allocation11 + $0xe8] sm:$0xff] }
 0x14d   : > { %2904 = vmatprep.subr.bf16.mxu1 %v3448_v15 }
 0x14e   : > { %2882 = vmatpush3.bf16.msra.mxu0 %v2881_v36 }
 0x14f   : > { %2907 = vmatprep.subr.bf16.mxu0 %v3448_v15 }
 0x150   : > { %2906 = vmatpush3.bf16.msra.mxu1 %v2905_v27 }
 0x151   : > { %2910 = vmatprep.subr.bf16.mxu1 %v3448_v15 }
 0x1e4   : > { %v2621_v59 = vpop.f32.mrb[0].mxu0 }
 0x1e5   : > { %v2643_v60 = vpop.f32.mrb[0].mxu1  ;;  %v2622_v62 = vpop.f32.mrb[1].mxu0 }
 0x1e6   : > { %v2644_v63 = vpop.f32.mrb[1].mxu1  ;;  %v2623_v0 = vadd.f32 %v2622_v62, %v2621_v59  ;;  %v2624_v2 = vpop.f32.mrb[2].mxu0  ;;  %v521_v59 = vld [vmem:[#allocation10 + $0xf8] sm:$0xff] }
 0x1e7   : > { %v2645_v1 = vadd.f32 %v2644_v63, %v2643_v60  ;;  %v2646_v3 = vpop.f32.mrb[2].mxu1  ;;  %v2625_v4 = vpop.f32.mrb[3].mxu0  ;;  %v522_v60 = vld [vmem:[#allocation10 + $0x110] sm:$0xff]  ;;  %v523_v2 = vld [vmem:[#allocation10 + $0x128] sm:$0xff] }
 0x1e8   : > { %v2647_v5 = vpop.f32.mrb[3].mxu1  ;;  %v1124_v6 = vadd.f32 %v2623_v0, %v543_v61  ;;  %v2926_v61 = vpack.c.bf16 %v522_v60, %v521_v59  ;;  %v1417_v62 = vld [vmem:[%s3789_s28] sm:$0xff]  ;;  %v524_v3 = vld [vmem:[#allocation10 + $0x140] sm:$0xff]  ;;  %v1623_v59 = vld [vmem:[#allocation11 + $0x108] sm:$0xff] }
 0x1e9   : > { %v2929_v4 = vpack.c.bf16 %v524_v3, %v523_v2  ;;  %v525_v5 = vld [vmem:[#allocation10 + $0x158] sm:$0xff]  ;;  %v1627_v60 = vld [vmem:[#allocation11 + $0x128] sm:$0xff] }
 0x1ea   : > { %v1164_v7 = vadd.f32 %v2645_v1, %v1124_v6  ;;  %v526_v6 = vld [vmem:[#allocation10 + $0x170] sm:$0xff]  ;;  %v1639_v3 = vld [vmem:[#allocation11 + $0x188] sm:$0xff] }
 0x204   : > { %v2665_v8 = vpop.f32.mrb[4].mxu0 }
 0x205   : > { %v2687_v9 = vpop.f32.mrb[4].mxu1  ;;  %v2666_v10 = vpop.f32.mrb[5].mxu0 }
 0x206   : > { %v2688_v11 = vpop.f32.mrb[5].mxu1  ;;  %v2667_v12 = vadd.f32 %v2666_v10, %v2665_v8  ;;  %v2668_v14 = vpop.f32.mrb[6].mxu0  ;;  %v1590_v8 = vld [vmem:[#allocation11] sm:$0xff]  ;;  %v1591_v10 = vld [vmem:[#allocation11 + $0x8] sm:$0xff] }
 0x207   : > { %v2689_v13 = vadd.f32 %v2688_v11, %v2687_v9  ;;  %v2690_v16 = vpop.f32.mrb[6].mxu1  ;;  %v2669_v17 = vpop.f32.mrb[7].mxu0  ;;  %v1594_v9 = vld [vmem:[#allocation11 + $0x20] sm:$0xff] }
 0x208   : > { %v2691_v18 = vpop.f32.mrb[7].mxu1  ;;  %v1204_v19 = vadd.f32 %v2667_v12, %v1164_v7  ;;  %v2932_v7 = vpack.c.bf16 %v526_v6, %v525_v5  ;;  %v2531_v11 = vcombine.low %v1590_v8, %v1594_v9  ;;  %v2532_v12 = vcombine.high %v1590_v8, %v1594_v9  ;;  %v1598_v14 = vld [vmem:[#allocation11 + $0x40] sm:$0xff] }
 0x209   : > { %v1602_v16 = vld [vmem:[#allocation11 + $0x60] sm:$0xff] }
 0x20a   : > { %v1244_v21 = vadd.f32 %v2689_v13, %v1204_v19  ;;  %v1595_v13 = vld [vmem:[#allocation11 + $0x28] sm:$0xff]  ;;  %v2540_v19 = vcombine.high %v1598_v14, %v1602_v16  ;;  %v1646_v8 = vld [vmem:[#allocation11 + $0x1c0] sm:$0xff] }
 0x20b   : > { %v2533_v17 = vcombine.low %v1591_v10, %v1595_v13  ;;  %v2534_v18 = vcombine.high %v1591_v10, %v1595_v13  ;;  %v1650_v9 = vld [vmem:[#allocation11 + $0x1e0] sm:$0xff]  ;;  %v1647_v10 = vld [vmem:[#allocation11 + $0x1c8] sm:$0xff] }
 0x20c   : > { %v1255_v22 = vadd.f32 %v2525_v20, %v1244_v21  ;;  %v2539_v20 = vcombine.low %v1598_v14, %v1602_v16  ;;  %v1610_v21 = vld [vmem:[#allocation11 + $0xa0] sm:$0xff]  ;;  %v2587_v13 = vcombine.low %v1646_v8, %v1650_v9 }
 0x20e   : > { %vm1256_vm1 = vcmp.gt.f32.partialorder %v1255_v22, 0.0  ;;  %v1257_v23 = vmul.f32 0.01, %v1255_v22 }
 0x210   : > { %v1258_v24 = vsel %vm1256_vm1, %v1255_v22, %v1257_v23 }
 0x211   : > { %2780 = vmatmul.mubr.f32.vlgmr.msra.gmra.mrb[8].mxu0 %v1258_v24  ;;  %v1614_v24 = vld [vmem:[#allocation11 + $0xc0] sm:$0xff] }
 0x212   : > { %2821 = vmatprep.mubr.msk.f32.mxu0 %vm3449_vm0, %v3450_v37  ;;  %2909 = vmatpush3.bf16.msra.mxu0 %v2908_v42  ;;  %v2556_v26 = vcombine.high %v1614_v24, %v1618_v25  ;;  %v2555_v27 = vcombine.low %v1614_v24, %v1618_v25  ;;  %v2529_v42 = vld [vmem:[#allocation13 + $0x2] ss:$0 sm:$0xff]  ;;  %v3452_v24 = vmov 0   ;;  %v2530_v25 = vld [vmem:[#allocation13 + $0x3] ss:$0 sm:$0xff] }
 0x213   : > { %2015 = vmatprep.subr.bf16.mxu0 %v2532_v12  ;;  %v1651_v12 = vld [vmem:[#allocation11 + $0x1e8] sm:$0xff] }
 0x214   : > { %v2589_v14 = vcombine.low %v1647_v10, %v1651_v12  ;;  %v2590_v16 = vcombine.high %v1647_v10, %v1651_v12 }
 0x2e4   : > { %v1331_v29 = vpop.f32.mrb[8].mxu0 }
 0x2e5   : > { %v1332_v30 = vadd.f32 %v2526_v28, %v1331_v29  ;;  %v2781_v31 = vpop.f32.mrb[9].mxu0  ;;  %v1622_v28 = vld [vmem:[#allocation11 + $0x100] sm:$0xff] }
 0x2e6   : > { %v1626_v29 = vld [vmem:[#allocation11 + $0x120] sm:$0xff] }
 0x2e7   : > { %vm1335_vm2 = vcmp.gt.f32.partialorder %v1332_v30, 0.0  ;;  %v1336_v32 = vmul.f32 0.01, %v1332_v30  ;;  %v2563_v31 = vcombine.low %v1622_v28, %v1626_v29 }
 0x2e9   : > { %v1337_v33 = vsel %vm1335_vm2, %v1332_v30, %v1336_v32  ;;  %v2564_v30 = vcombine.high %v1622_v28, %v1626_v29  ;;  %v1630_v32 = vld [vmem:[#allocation11 + $0x140] sm:$0xff]  ;;  %v1600_v29 = vld [vmem:[#allocation11 + $0x50] sm:$0xff] }
 0x2ea   : > { %2815 = vmatmul.mubr.f32.vlgmr.msra.gmra.mrb[8].mxu1 %v1337_v33  ;;  %v1634_v33 = vld [vmem:[#allocation11 + $0x160] sm:$0xff] }
 0x2eb   : > { %2856 = vmatprep.mubr.msk.f32.mxu1 %vm3449_vm0, %v3450_v37  ;;  %2912 = vmatpush3.bf16.msra.mxu1 %v2911_v46  ;;  %v1599_v46 = vld [vmem:[#allocation11 + $0x48] sm:$0xff] }
 0x2ec   : > { %2913 = vmatprep.subr.bf16.mxu1 %v3448_v15  ;;  %v2542_v49 = vcombine.high %v1599_v46, %v1603_v47  ;;  %v2541_v53 = vcombine.low %v1599_v46, %v1603_v47  ;;  %v1616_v46 = vld [vmem:[#allocation11 + $0xd0] sm:$0xff] }
 0x2ed   : > { %v1620_v47 = vld [vmem:[#allocation11 + $0xf0] sm:$0xff] }
 0x2ef   : > { %2915 = vmatpush3.bf16.msra.mxu1 %v2914_v48 }
 0x2f0   : > { %2916 = vmatprep.subr.bf16.mxu1 %v3448_v15 }
 0x2f3   : > { %2918 = vmatpush3.bf16.msra.mxu1 %v2917_v51  ;;  %v1607_v51 = vld [vmem:[#allocation11 + $0x88] sm:$0xff] }
 0x2f4   : > { %2919 = vmatprep.subr.bf16.mxu1 %v3448_v15 }
 0x2f7   : > { %2921 = vmatpush3.bf16.msra.mxu1 %v2920_v55  ;;  %v1615_v55 = vld [vmem:[#allocation11 + $0xc8] sm:$0xff] }
 0x2f8   : > { %2922 = vmatprep.subr.bf16.mxu1 %v3448_v15 }
 0x2fb   : > { %2924 = vmatpush3.bf16.msra.mxu1 %v2923_v58  ;;  %v2558_v58 = vcombine.high %v1615_v55, %v1619_v56 }
 0x2fc   : > { %2925 = vmatprep.subr.bf16.mxu1 %v3448_v15 }
 0x2ff   : > { %2927 = vmatpush3.bf16.msra.mxu1 %v2926_v61  ;;  %v2557_v61 = vcombine.low %v1615_v55, %v1619_v56  ;;  %v1628_v55 = vld [vmem:[#allocation11 + $0x130] sm:$0xff]  ;;  %v1625_v56 = vld [vmem:[#allocation11 + $0x118] sm:$0xff] }
 0x300   : > { %2928 = vmatprep.subr.bf16.mxu1 %v3448_v15 }
 0x303   : > { %2930 = vmatpush3.bf16.msra.mxu1 %v2929_v4  ;;  %v1643_v4 = vld [vmem:[#allocation11 + $0x1a8] sm:$0xff] }
 0x304   : > { %2931 = vmatprep.subr.bf16.mxu1 %v3448_v15  ;;  %v1606_v15 = vld [vmem:[#allocation11 + $0x80] sm:$0xff]  ;;  %v2582_v6 = vcombine.high %v1639_v3, %v1643_v4 }
 0x305   : > { %v2548_v22 = vcombine.high %v1606_v15, %v1610_v21  ;;  %v2547_v23 = vcombine.low %v1606_v15, %v1610_v21  ;;  %v1597_v15 = vld [vmem:[#allocation11 + $0x38] sm:$0xff] }
 0x307   : > { %2933 = vmatpush3.bf16.msra.mxu1 %v2932_v7  ;;  %v2581_v7 = vcombine.low %v1639_v3, %v1643_v4 }
 0x308   : > { %2056 = vmatprep.subr.bf16.mxu1 %v2534_v18  ;;  %v1596_v18 = vld [vmem:[#allocation11 + $0x30] sm:$0xff] }
 0x3bd   : > { %v1410_v35 = vpop.f32.mrb[8].mxu1 }
 0x3be   : > { %v1411_v36 = vadd.f32 %v2527_v34, %v1410_v35  ;;  %v2816_v38 = vpop.f32.mrb[9].mxu1  ;;  %v2572_v34 = vcombine.high %v1630_v32, %v1634_v33  ;;  %v2571_v35 = vcombine.low %v1630_v32, %v1634_v33  ;;  %v1601_v32 = vld [vmem:[#allocation11 + $0x58] sm:$0xff] }
 0x3bf   : > { %v1642_v38 = vld [vmem:[#allocation11 + $0x1a0] sm:$0xff]  ;;  %v1605_v33 = vld [vmem:[#allocation11 + $0x78] sm:$0xff] }
 0x3c0   : > { %v1414_v39 = vmul.f32 0.5, %v1411_v36  ;;  %2211 = vst [vmem:[%s3839_s27] sm:$0xff] %v1411_v36 }
 0x3c2   : > { %v1415_v37 = vmul.f32 1.442695, %v1414_v39 }
 0x3c4   : > { %3119 = vpow2.f32 %v1415_v37 }
 0x3ce   : > { %v3120_v52 = vpop.eup %3119 }
 0x3cf   : > { %1419 = vrot.lane.b32.xlu0 %v3120_v52, %s3451_s19  ;;  %v1611_v52 = vld [vmem:[#allocation11 + $0xa8] sm:$0xff] }
 0x3d0   : > { %v2550_v54 = vcombine.high %v1607_v51, %v1611_v52  ;;  %v2549_v57 = vcombine.low %v1607_v51, %v1611_v52  ;;  %v2560_v52 = vcombine.high %v1616_v46, %v1620_v47 }
 0x441   : > { %v1420_v63 = vpop.permute.xlu0 %1419 }
 0x442   : > { %v1422_v0 = vmul.f32 %v1420_v63, %v1417_v62  ;;  %v2566_v62 = vcombine.high %v1623_v59, %v1627_v60  ;;  %v1631_v63 = vld [vmem:[#allocation11 + $0x148] sm:$0xff] }
 0x444   : > { %v1423_v1 = vadd.f32 %v1422_v0, %v1411_v36  ;;  %v1638_v36 = vld [vmem:[#allocation11 + $0x180] sm:$0xff]  ;;  %v1635_v0 = vld [vmem:[#allocation11 + $0x168] sm:$0xff] }
 0x445   : > { %v2580_v39 = vcombine.high %v1638_v36, %v1642_v38  ;;  %v2579_v40 = vcombine.low %v1638_v36, %v1642_v38  ;;  %v2574_v2 = vcombine.high %v1631_v63, %v1635_v0  ;;  %v2573_v5 = vcombine.low %v1631_v63, %v1635_v0  ;;  %v1636_v63 = vld [vmem:[#allocation11 + $0x170] sm:$0xff]  ;;  %v1633_v0 = vld [vmem:[#allocation11 + $0x158] sm:$0xff] }
 0x446   : > { %2822 = vmatmul.mubr.msk.f32.vlgmr.msra.gmra.mrb[10].mxu0 %vm1426_vm3, %v1423_v1  ;;  %v2565_v1 = vcombine.low %v1623_v59, %v1627_v60  ;;  %v2546_v38 = vcombine.high %v1601_v32, %v1605_v33 }
 0x447   : > { %2016 = vmatpush1.bf16.msra.mxu0 %v2531_v11  ;;  %v2588_v11 = vcombine.high %v1646_v8, %v1650_v9  ;;  %2047 = vmatprep.mubr.bf16.mxu0 %v3452_v24  ;;  %v1641_v8 = vld [vmem:[#allocation11 + $0x198] sm:$0xff] }
 0x448   : > { %2017 = vmatprep.subr.bf16.mxu0 %v2540_v19  ;;  %v1593_v19 = vld [vmem:[#allocation11 + $0x18] sm:$0xff] }
 0x449   : > { %v1645_v9 = vld [vmem:[#allocation11 + $0x1b8] sm:$0xff] }
 0x44b   : > { %2018 = vmatpush1.bf16.msra.mxu0 %v2539_v20 }
 0x44c   : > { %2019 = vmatprep.subr.bf16.mxu0 %v2548_v22  ;;  %v2537_v22 = vcombine.low %v1593_v19, %v1597_v15 }
 0x44f   : > { %2020 = vmatpush1.bf16.msra.mxu0 %v2547_v23  ;;  %v2538_v23 = vcombine.high %v1593_v19, %v1597_v15 }
 0x450   : > { %2021 = vmatprep.subr.bf16.mxu0 %v2556_v26 }
 0x453   : > { %2022 = vmatpush1.bf16.msra.mxu0 %v2555_v27 }
 0x454   : > { %2023 = vmatprep.subr.bf16.mxu0 %v2564_v30 }
 0x457   : > { %2024 = vmatpush1.bf16.msra.mxu0 %v2563_v31  ;;  %v1604_v31 = vld [vmem:[#allocation11 + $0x70] sm:$0xff] }
 0x458   : > { %2025 = vmatprep.subr.bf16.mxu0 %v2572_v34  ;;  %v2544_v36 = vcombine.high %v1600_v29, %v1604_v31 }
 0x45b   : > { %2026 = vmatpush1.bf16.msra.mxu0 %v2571_v35 }
 0x45c   : > { %2027 = vmatprep.subr.bf16.mxu0 %v2580_v39  ;;  %v1608_v39 = vld [vmem:[#allocation11 + $0x90] sm:$0xff] }
 0x45f   : > { %2028 = vmatpush1.bf16.msra.mxu0 %v2579_v40  ;;  %v1612_v40 = vld [vmem:[#allocation11 + $0xb0] sm:$0xff] }
 0x460   : > { %2029 = vmatprep.subr.bf16.mxu0 %v2588_v11 }
 0x463   : > { %2030 = vmatpush1.bf16.msra.mxu0 %v2587_v13  ;;  %v2586_v13 = vcombine.high %v1641_v8, %v1645_v9 }
 0x519   : > { %v1496_v37 = vpop.f32.mrb[10].mxu0 }
 0x51a   : > { %v1497_v43 = vadd.f32 %v1496_v37, %v544_v41  ;;  %v2823_v44 = vpop.f32.mrb[11].mxu0  ;;  %v1609_v41 = vld [vmem:[#allocation11 + $0x98] sm:$0xff]  ;;  %v2543_v37 = vcombine.low %v1600_v29, %v1604_v31 }
 0x51b   : > { %v2552_v44 = vcombine.high %v1608_v39, %v1612_v40 }
 0x51c   : > { %v1506_v45 = vadd.f32 %v2529_v42, %v1497_v43  ;;  %v1613_v42 = vld [vmem:[#allocation11 + $0xb8] sm:$0xff]  ;;  %v2545_v43 = vcombine.low %v1601_v32, %v1605_v33 }
 0x51d   : > { %v2553_v51 = vcombine.low %v1609_v41, %v1613_v42 }
 0x51e   : > { %v1508_v48 = vmul.f32 0.01, %v1506_v45  ;;  %vm1507_vm4 = vcmp.gt.f32.partialorder %v1506_v45, 0.0 }
 0x520   : > { %v1509_v50 = vsel %vm1507_vm4, %v1506_v45, %v1508_v48  ;;  %v2554_v45 = vcombine.high %v1609_v41, %v1613_v42  ;;  %v1617_v48 = vld [vmem:[#allocation11 + $0xd8] sm:$0xff] }
 0x521   : > { %2857 = vmatmul.mubr.f32.vlgmr.msra.gmra.mrb[10].mxu1 %v1509_v50  ;;  %v2551_v50 = vcombine.low %v1608_v39, %v1612_v40 }
 0x522   : > { %2057 = vmatpush1.bf16.msra.mxu1 %v2533_v17  ;;  %v1592_v17 = vld [vmem:[#allocation11 + $0x10] sm:$0xff]  ;;  %2088 = vmatprep.mubr.bf16.mxu1 %v3452_v24 }
 0x523   : > { %2058 = vmatprep.subr.bf16.mxu1 %v2542_v49  ;;  %v2536_v20 = vcombine.high %v1592_v17, %v1596_v18  ;;  %v2535_v21 = vcombine.low %v1592_v17, %v1596_v18  ;;  %v1621_v49 = vld [vmem:[#allocation11 + $0xf8] sm:$0xff] }
 0x524   : > { %v2561_v59 = vcombine.low %v1617_v48, %v1621_v49  ;;  %v1649_v17 = vld [vmem:[#allocation11 + $0x1d8] sm:$0xff] }
 0x525   : > { %2097 = vmatprep.subr.bf16.mxu0 %v2536_v20  ;;  %v1653_v18 = vld [vmem:[#allocation11 + $0x1f8] sm:$0xff]  ;;  %v2585_v20 = vcombine.low %v1641_v8, %v1645_v9 }
 0x526   : > { %2059 = vmatpush1.bf16.msra.mxu1 %v2541_v53  ;;  %v2562_v53 = vcombine.high %v1617_v48, %v1621_v49 }
 0x527   : > { %2060 = vmatprep.subr.bf16.mxu1 %v2550_v54  ;;  %v1624_v54 = vld [vmem:[#allocation11 + $0x110] sm:$0xff] }
 0x528   : > { %v2568_v60 = vcombine.high %v1624_v54, %v1628_v55 }
 0x52a   : > { %2061 = vmatpush1.bf16.msra.mxu1 %v2549_v57  ;;  %v1629_v57 = vld [vmem:[#allocation11 + $0x138] sm:$0xff] }
 0x52b   : > { %2062 = vmatprep.subr.bf16.mxu1 %v2558_v58  ;;  %v2559_v58 = vcombine.low %v1616_v46, %v1620_v47  ;;  %v2569_v3 = vcombine.low %v1625_v56, %v1629_v57 }
 0x52e   : > { %2063 = vmatpush1.bf16.msra.mxu1 %v2557_v61  ;;  %v2570_v61 = vcombine.high %v1625_v56, %v1629_v57 }
 0x52f   : > { %2064 = vmatprep.subr.bf16.mxu1 %v2566_v62  ;;  %v1632_v62 = vld [vmem:[#allocation11 + $0x150] sm:$0xff] }
 0x530   : > { %v2576_v4 = vcombine.high %v1632_v62, %v1636_v63  ;;  %v2575_v10 = vcombine.low %v1632_v62, %v1636_v63 }
 0x532   : > { %2065 = vmatpush1.bf16.msra.mxu1 %v2565_v1  ;;  %v1637_v1 = vld [vmem:[#allocation11 + $0x178] sm:$0xff] }
 0x533   : > { %2066 = vmatprep.subr.bf16.mxu1 %v2574_v2  ;;  %v2567_v2 = vcombine.low %v1624_v54, %v1628_v55  ;;  %v2577_v11 = vcombine.low %v1633_v0, %v1637_v1 }
 0x536   : > { %2067 = vmatpush1.bf16.msra.mxu1 %v2573_v5  ;;  %v2578_v5 = vcombine.high %v1633_v0, %v1637_v1 }
 0x537   : > { %2068 = vmatprep.subr.bf16.mxu1 %v2582_v6  ;;  %v1640_v6 = vld [vmem:[#allocation11 + $0x190] sm:$0xff] }
 0x53a   : > { %2069 = vmatpush1.bf16.msra.mxu1 %v2581_v7  ;;  %v1644_v7 = vld [vmem:[#allocation11 + $0x1b0] sm:$0xff] }
 0x53b   : > { %2070 = vmatprep.subr.bf16.mxu1 %v2590_v16  ;;  %v2584_v12 = vcombine.high %v1640_v6, %v1644_v7  ;;  %v1652_v16 = vld [vmem:[#allocation11 + $0x1f0] sm:$0xff]  ;;  %v2583_v19 = vcombine.low %v1640_v6, %v1644_v7 }
 0x53e   : > { %2071 = vmatpush1.bf16.msra.mxu1 %v2589_v14  ;;  %v1648_v14 = vld [vmem:[#allocation11 + $0x1d0] sm:$0xff] }
 0x53f   : > { %2138 = vmatprep.subr.bf16.mxu1 %v2538_v23  ;;  %v2592_v15 = vcombine.high %v1648_v14, %v1652_v16  ;;  %v2593_v23 = vcombine.low %v1649_v17, %v1653_v18 }
 0x5f4   : > { %v1582_v26 = vpop.f32.mrb[10].mxu1 }
 0x5f5   : > { %v1583_v27 = vadd.f32 %v2530_v25, %v1582_v26  ;;  %v2858_v28 = vpop.f32.mrb[11].mxu1 }
 0x5f7   : > { %vm1586_vm5 = vcmp.gt.f32.partialorder %v1583_v27, 0.0  ;;  %v1587_v30 = vmul.f32 0.01, %v1583_v27 }
 0x5f9   : > { %v1588_v34 = vsel %vm1586_vm5, %v1583_v27, %v1587_v30 }
 0x5fa   : > { %v3857_v35 = vpack.c.bf16 %v1588_v34, %v1588_v34 }
 0x5fc   : > { %2048 = vmatmul.mubr.bf16.vlgmr.msra.gmra.mrb[12].mxu0 %v3857_v35  ;;  %2089 = vmatmul.mubr.bf16.vlgmr.msra.gmra.mrb[12].mxu1 %v3857_v35 }
 0x5fd   : > { %2098 = vmatpush1.bf16.msra.mxu0 %v2535_v21  ;;  %2139 = vmatpush1.bf16.msra.mxu1 %v2537_v22  ;;  %v2594_v21 = vcombine.high %v1649_v17, %v1653_v18  ;;  %v2591_v22 = vcombine.low %v1648_v14, %v1652_v16 }
 0x5fe   : > { %2099 = vmatprep.subr.bf16.mxu0 %v2544_v36  ;;  %2140 = vmatprep.subr.bf16.mxu1 %v2546_v38 }
 0x5ff   : > { %2129 = vmatprep.mubr.bf16.mxu0 %v3452_v24  ;;  %2170 = vmatprep.mubr.bf16.mxu1 %v3452_v24 }
 0x601   : > { %2100 = vmatpush1.bf16.msra.mxu0 %v2543_v37  ;;  %2141 = vmatpush1.bf16.msra.mxu1 %v2545_v43 }
 0x602   : > { %2101 = vmatprep.subr.bf16.mxu0 %v2552_v44  ;;  %2142 = vmatprep.subr.bf16.mxu1 %v2554_v45 }
 0x605   : > { %2102 = vmatpush1.bf16.msra.mxu0 %v2551_v50  ;;  %2143 = vmatpush1.bf16.msra.mxu1 %v2553_v51 }
 0x606   : > { %2103 = vmatprep.subr.bf16.mxu0 %v2560_v52  ;;  %2144 = vmatprep.subr.bf16.mxu1 %v2562_v53 }
 0x609   : > { %2104 = vmatpush1.bf16.msra.mxu0 %v2559_v58  ;;  %2145 = vmatpush1.bf16.msra.mxu1 %v2561_v59 }
 0x60a   : > { %2105 = vmatprep.subr.bf16.mxu0 %v2568_v60  ;;  %2146 = vmatprep.subr.bf16.mxu1 %v2570_v61 }
 0x60d   : > { %2106 = vmatpush1.bf16.msra.mxu0 %v2567_v2  ;;  %2147 = vmatpush1.bf16.msra.mxu1 %v2569_v3 }
 0x60e   : > { %2107 = vmatprep.subr.bf16.mxu0 %v2576_v4  ;;  %2148 = vmatprep.subr.bf16.mxu1 %v2578_v5 }
 0x611   : > { %2108 = vmatpush1.bf16.msra.mxu0 %v2575_v10  ;;  %2149 = vmatpush1.bf16.msra.mxu1 %v2577_v11 }
 0x612   : > { %2109 = vmatprep.subr.bf16.mxu0 %v2584_v12  ;;  %2150 = vmatprep.subr.bf16.mxu1 %v2586_v13 }
 0x615   : > { %2110 = vmatpush1.bf16.msra.mxu0 %v2583_v19  ;;  %2151 = vmatpush1.bf16.msra.mxu1 %v2585_v20 }
 0x616   : > { %2111 = vmatprep.subr.bf16.mxu0 %v2592_v15  ;;  %2152 = vmatprep.subr.bf16.mxu1 %v2594_v21 }
 0x619   : > { %2112 = vmatpush1.bf16.msra.mxu0 %v2591_v22  ;;  %2153 = vmatpush1.bf16.msra.mxu1 %v2593_v23 }
 0x61c   : > { %2130 = vmatmul.mubr.bf16.vlgmr.msra.gmra.mrb[16].mxu0 %v3857_v35  ;;  %2171 = vmatmul.mubr.bf16.vlgmr.msra.gmra.mrb[16].mxu1 %v3857_v35 }
 0x61d   : > { %3336 = shalt.err (!%p3333_p4)
}
 0x61e   : > { %s3337_s29 = scalar_lea.hbm %s3868_s8, 128  ;;  %s3341_s13 = scalar_lea.hbm %s4013_s17, 256 }
 0x61f   : > { %p3338_p10 = scmp.ne.s32.totalorder %s3868_s8, %s3337_s29  ;;  %p3342_p12 = scmp.lt.u32.totalorder %s3868_s8, %s4013_s17 }
 0x620   : > { %p3343_p0 = scmp.lt.u32.totalorder %s3341_s13, %s3337_s29  ;;  %p3345_p9 = scmp.lt.u32.totalorder %s3337_s29, %s3868_s8 }
 0x621   : > { %p3339_p3 = pnand %p3338_p10, %p4014_p13 }
 0x622   : > { %p3344_p7 = por %p3343_p0, %p3342_p12 }
 0x623   : > { %p3340_p11 = pneg %p3339_p3 }
 0x624   : > { %p3346_p1 = por %p3345_p9, %p3344_p7 }
 0x626   : > { %p3347_p6 = pnand %p3346_p1, %p3340_p11 }
 0x628   : > { %3350 = shalt.err (!%p3347_p6)
}
 0x629   : > { %2957 = dma.vmem_to_hbm [thread:$0]  (%p4014_p13), %s2246_s1, 128, %s3868_s8, %s2218_s30   ;;  %v1655_v24 = vlaneseq  ;;  %v493_v28 = vld [vmem:[#allocation13 + $0x4] sm:$0xff] }
 0x62a   : > { %s2451_s21 = sshll.u32 %s3775_s22, 6  ;;  %s2604_s14 = sshll.u32 %s3526_s15, 10 }
 0x62b   : > { %v1656_v25 = vshrl.u32 %v1655_v24, 7  ;;  %s3889_s6 = scalar_lea.vmem [#allocation14], %s2451_s21  ;;  %s4015_s1 = sld [smem:[#allocation32_spill]] }
 0x62c   : > { %s2232_s19 = sshll.u32 %s3889_s6, 4  ;;  %s2213_s11 = scalar_lea.sflag [#allocation4], %s3775_s22  ;;  %s3902_s19 = int_to_ptr.vmem [resolvable:$true] %s2232_s19 }
 0x62d   : > { %v1657_v26 = vsub.s32 0, %v1656_v25  ;;  %v1665_v27 = vsub.s32 2, %v1656_v25  ;;  %v1661_v29 = vsub.s32 1, %v1656_v25  ;;  %v1669_v30 = vsub.s32 3, %v1656_v25  ;;  %s3351_s8 = scalar_lea.vmem %s3902_s19, 1024  ;;  %s3454_s30 = smov [#allocation14]  }
 0x62e   : > { %v1673_v55 = vsub.s32 4, %v1656_v25  ;;  %v1681_v56 = vsub.s32 6, %v1656_v25  ;;  %v1677_v57 = vsub.s32 5, %v1656_v25  ;;  %v1685_v58 = vsub.s32 7, %v1656_v25  ;;  %p3352_p8 = scmp.ne.s32.totalorder %s3902_s19, %s3351_s8  ;;  %s3355_s9 = sshll.u32 %s3454_s30, 4  ;;  %s3356_s9 = int_to_ptr.vmem [resolvable:$false] %s3355_s9 }
 0x62f   : > { %v1658_v31 = vrot.slane %v493_v28, %v1657_v26  ;;  %v1666_v32 = vrot.slane %v493_v28, %v1665_v27  ;;  %v1662_v33 = vrot.slane %v493_v28, %v1661_v29  ;;  %v1670_v34 = vrot.slane %v493_v28, %v1669_v30  ;;  %s3357_s25 = scalar_lea.vmem %s3356_s9, 2048  ;;  %p3358_p4 = scmp.lt.s32.totalorder %s3902_s19, %s3356_s9 }
 0x630   : > { %v1674_v59 = vrot.slane %v493_v28, %v1673_v55  ;;  %v1682_v60 = vrot.slane %v493_v28, %v1681_v56  ;;  %v1678_v61 = vrot.slane %v493_v28, %v1677_v57  ;;  %v1686_v62 = vrot.slane %v493_v28, %v1685_v58  ;;  %p3353_p5 = pnand %p3352_p8, %p4014_p13  ;;  %p3359_p10 = scmp.lt.s32.totalorder %s3357_s25, %s3351_s8 }
 0x631   : > { %s3900_s18 = scalar_lea.hbm %s4015_s1, %s2604_s14 }
 0x632   : > { %p3354_p2 = pneg %p3353_p5  ;;  %p3360_p3 = por %p3359_p10, %p3358_p4 }
 0x634   : > { %p3361_p11 = pnand %p3360_p3, %p3354_p2 }
 0x6cf   : > { %v2049_v35 = vpop.f32.mrb[12].mxu0  ;;  %v2090_v36 = vpop.f32.mrb[12].mxu1 }
 0x6d0   : > { %v2050_v38 = vadd.f32 %v2049_v35, %v1658_v31  ;;  %v2091_v39 = vadd.f32 %v2090_v36, %v1666_v32  ;;  %v2051_v40 = vpop.f32.mrb[13].mxu0  ;;  %v2092_v41 = vpop.f32.mrb[13].mxu1 }
 0x6d1   : > { %v2052_v42 = vadd.f32 %v2051_v40, %v1662_v33  ;;  %v2093_v37 = vadd.f32 %v2092_v41, %v1670_v34  ;;  %v2053_v43 = vpop.f32.mrb[14].mxu0  ;;  %v2094_v44 = vpop.f32.mrb[14].mxu1 }
 0x6d2   : > { %vm2179_vm6 = vcmp.gt.f32.partialorder %v2050_v38, 0.0  ;;  %v2187_v45 = vmul.f32 0.01, %v2050_v38  ;;  %vm2181_vm7 = vcmp.gt.f32.partialorder %v2091_v39, 0.0  ;;  %v2189_v46 = vmul.f32 0.01, %v2091_v39 }
 0x6d3   : > { %vm2180_vm8 = vcmp.gt.f32.partialorder %v2052_v42, 0.0  ;;  %v2188_v47 = vmul.f32 0.01, %v2052_v42  ;;  %vm2182_vm9 = vcmp.gt.f32.partialorder %v2093_v37, 0.0  ;;  %v2190_v48 = vmul.f32 0.01, %v2093_v37 }
 0x6d4   : > { %v2195_v49 = vsel %vm2179_vm6, %v2050_v38, %v2187_v45  ;;  %v2197_v50 = vsel %vm2181_vm7, %v2091_v39, %v2189_v46  ;;  %v2054_v51 = vpop.f32.mrb[15].mxu0  ;;  %v2095_v52 = vpop.f32.mrb[15].mxu1 }
 0x6d5   : > { %2203 = vst [vmem:[%s3889_s6] sm:$0xff] %v2195_v49  ;;  %2205 = vst [vmem:[%s3889_s6 + $0x10] sm:$0xff] %v2197_v50  ;;  %v2196_v53 = vsel %vm2180_vm8, %v2052_v42, %v2188_v47  ;;  %v2198_v54 = vsel %vm2182_vm9, %v2093_v37, %v2190_v48 }
 0x6d6   : > { %2204 = vst [vmem:[%s3889_s6 + $0x8] sm:$0xff] %v2196_v53  ;;  %2206 = vst [vmem:[%s3889_s6 + $0x18] sm:$0xff] %v2198_v54 }
 0x6ef   : > { %v2131_v63 = vpop.f32.mrb[16].mxu0  ;;  %v2172_v0 = vpop.f32.mrb[16].mxu1 }
 0x6f0   : > { %v2132_v1 = vadd.f32 %v2131_v63, %v1674_v59  ;;  %v2173_v2 = vadd.f32 %v2172_v0, %v1682_v60  ;;  %v2133_v3 = vpop.f32.mrb[17].mxu0  ;;  %v2174_v4 = vpop.f32.mrb[17].mxu1 }
 0x6f1   : > { %v2134_v5 = vadd.f32 %v2133_v3, %v1678_v61  ;;  %v2175_v6 = vadd.f32 %v2174_v4, %v1686_v62  ;;  %v2135_v7 = vpop.f32.mrb[18].mxu0  ;;  %v2176_v8 = vpop.f32.mrb[18].mxu1 }
 0x6f2   : > { %vm2183_vm10 = vcmp.gt.f32.partialorder %v2132_v1, 0.0  ;;  %v2191_v9 = vmul.f32 0.01, %v2132_v1  ;;  %vm2185_vm11 = vcmp.gt.f32.partialorder %v2173_v2, 0.0  ;;  %v2193_v10 = vmul.f32 0.01, %v2173_v2 }
 0x6f3   : > { %vm2184_vm12 = vcmp.gt.f32.partialorder %v2134_v5, 0.0  ;;  %v2192_v11 = vmul.f32 0.01, %v2134_v5  ;;  %vm2186_vm13 = vcmp.gt.f32.partialorder %v2175_v6, 0.0  ;;  %v2194_v12 = vmul.f32 0.01, %v2175_v6 }
 0x6f4   : > { %v2199_v13 = vsel %vm2183_vm10, %v2132_v1, %v2191_v9  ;;  %v2201_v14 = vsel %vm2185_vm11, %v2173_v2, %v2193_v10  ;;  %v2136_v16 = vpop.f32.mrb[19].mxu0  ;;  %v2177_v17 = vpop.f32.mrb[19].mxu1 }
 0x6f5   : > { %2207 = vst [vmem:[%s3889_s6 + $0x20] sm:$0xff] %v2199_v13  ;;  %2209 = vst [vmem:[%s3889_s6 + $0x30] sm:$0xff] %v2201_v14  ;;  %v2200_v18 = vsel %vm2184_vm12, %v2134_v5, %v2192_v11  ;;  %v2202_v19 = vsel %vm2186_vm13, %v2175_v6, %v2194_v12 }
 0x6f6   : > { %2208 = vst [vmem:[%s3889_s6 + $0x28] sm:$0xff] %v2200_v18  ;;  %2210 = vst [vmem:[%s3889_s6 + $0x38] sm:$0xff] %v2202_v19 }
 0x6f7   : > { %3364 = shalt.err (!%p3361_p11)
}
 0x6f8   : > { %s3365_s22 = scalar_lea.hbm %s3900_s18, 1024  ;;  %s3369_s29 = scalar_lea.hbm %s4015_s1, 2048 }
 0x6f9   : > { %p3366_p12 = scmp.ne.s32.totalorder %s3900_s18, %s3365_s22  ;;  %p3370_p9 = scmp.lt.u32.totalorder %s3900_s18, %s4015_s1 }
 0x6fa   : > { %p3371_p1 = scmp.lt.u32.totalorder %s3369_s29, %s3365_s22  ;;  %p3373_p8 = scmp.lt.u32.totalorder %s3365_s22, %s3900_s18 }
 0x6fb   : > { %p3367_p0 = pnand %p3366_p12, %p4014_p13 }
 0x6fc   : > { %p3372_p6 = por %p3371_p1, %p3370_p9 }
 0x6fd   : > { %p3368_p7 = pneg %p3367_p0 }
 0x6fe   : > { %p3374_p5 = por %p3373_p8, %p3372_p6 }
 0x700   : > { %p3375_p2 = pnand %p3374_p5, %p3368_p7 }
 0x702   : > { %3378 = shalt.err (!%p3375_p2)
}
 0x703   : > { %2956 = dma.vmem_to_hbm [thread:$0]  (%p4014_p13), %s3902_s19, 1024, %s3900_s18, %s2213_s11  }
 0x704 PF: > { %s4016_s13 = sld [smem:[#allocation23_spill]]  ;;  %s4017_s27 = sld [smem:[#allocation28_spill]] }
 0x705   : > { %p4019_p10 = scmp.ge.s32.totalorder %s3433_s12, 2 }
 0x70a   : > { %s2257_s3 = sand.u32 1, %s4016_s13   ;;  %p4018_p4 = scmp.ne.s32.totalorder %s4017_s27, 0 }
 0x70b   : > { %s2258_s21 = scalar_lea.sflag [#allocation4], %s2257_s3 }
 0x70c   : > { %p2984_p3 = pnand %p4019_p10, %p4018_p4 }
 0x70e   : > { %3412 = dma.done.wait (!%p2984_p3), %s2258_s21, 1024  }
 0x70f   : > { %3414 = vsyncadd (!%p2984_p3), %s2258_s21, 4294966272  ;;  %s2267_s6 = scalar_lea.sflag [#allocation16], %s2257_s3 }
 0x710   : > { %3416 = dma.done.wait (!%p2984_p3), %s2267_s6, 128  }
 0x711   : > { %3418 = vsyncadd (!%p2984_p3), %s2267_s6, 4294967168  ;;  %s4020_s12 = sld [smem:[#allocation25_spill]]  ;;  %s4021_s24 = sld [smem:[#allocation24_spill]] }
 0x712   : > { %s4022_s11 = sld [smem:[#allocation26_spill]]  ;;  %s4023_s30 = smov %s3425_s10 }
 0x717   : > { %p31_p13 = scmp.ge.s32.totalorder %s4020_s12, 4   ;;  %s4024_s10 = smov %s4021_s24 }
 0x719   :  { %33 = sbr.rel (!%p31_p13) target bundleno = 17 (0x11), region = 154 }
 0x720   :  { %2272 = vsyncpa [#allocation3], 1 }
 0x721   :  { %2274 = vsyncpa [#allocation3 + $0x1], 1 }
 0x722   :  { %2275 = vsyncpa [#allocation6], 1 }
 0x723   :  { %2277 = vsyncpa [#allocation6 + $0x1], 1 }
 0x724   :  { %2278 = vsyncpa [#allocation9], 1 }
 0x725   :  { %2279 = vsyncpa [#allocation12], 1 }
 0x726   :  { %2280 = vsyncpa [#allocation4], 1 }
 0x727   :  { %2282 = vsyncpa [#allocation4 + $0x1], 1 }
 0x728   :  { %2283 = vsyncpa [#allocation16], 1 }
 0x729   :  { %2285 = vsyncpa [#allocation16 + $0x1], 1 }

</bundles_post_ra>
